<compile_context>
chip_gen: v7x
topology: tpu7x:2x2x1
jax: 0.10.0
libtpu: 0.0.40
codegen_flags: <defaults>
</compile_context>

<pallas_src>
import functools
import math

import jax
import jax.numpy as jnp
from jax.experimental import pallas as pl
from jax.experimental.pallas import tpu as pltpu


# ----------------------------------------------------------------------------
# Host-side glue: TopKBinarizer (forward semantics only)
# ----------------------------------------------------------------------------
def topk_binarizer(scores, threshold):
    """M_i = 1 iff scores_i is among the top int(threshold * n) values, else 0."""
    n = scores.shape[0]
    j = int(threshold * n)
    order = jnp.argsort(-scores)  # descending
    mask = jnp.zeros((n,), dtype=jnp.float32)
    mask = mask.at[order[:j]].set(1.0)
    return mask


# ----------------------------------------------------------------------------
# Pallas kernel: full forward for one batch element
# ----------------------------------------------------------------------------
def bert_self_attention_kernel(
    x_ref,                  # (1, S, D) VMEM
    wqkv_ref, bqkv_ref,     # (D, 3D), (1, 3D)  (query block pre-scaled by 1/sqrt(d))
    wg_ref, bg_ref,         # (D, 2), (1, 2)
    hm_ref,                 # (2, H) SMEM (binarized head masks for expert 0 / 1)
    ctx_ref,                # (1, S, D) VMEM out
    probs_ref,              # (1, H, S, S) VMEM out
    *, num_heads, head_size, hidden, compute_dtype,
):
    d = head_size
    D = hidden
    cd = compute_dtype
    x = x_ref[0]                                   # (S, D) f32

    # --- gate linear + argmax routing (f32 so routing never flips vs ref) --
    g = jnp.dot(x, wg_ref[...], preferred_element_type=jnp.float32) + bg_ref[...]
    em0 = g[:, 0:1] >= g[:, 1:2]                   # (S, 1); ties -> expert 0 (argmax)

    # --- fused Q/K/V projection: one (S,D)@(D,3D) MXU matmul ---------------
    xc = x.astype(cd)
    qkv = jnp.dot(xc, wqkv_ref[...].astype(cd),
                  preferred_element_type=jnp.float32) + bqkv_ref[...]
    q_full, k_full, v_full = qkv[:, 0:D], qkv[:, D:2 * D], qkv[:, 2 * D:3 * D]
    bq_row = bqkv_ref[:, 0:D]                      # (1, D)
    bk_row = bqkv_ref[:, D:2 * D]
    bv_row = bqkv_ref[:, 2 * D:3 * D]

    # --- per-expert masked Q/K/V, hoisted out of the head loop -------------
    # Rows not routed to expert m collapse to the bias row
    # (where(em, x, 0) @ W + b == where(em, x @ W + b, b)).
    masked = []
    for m in range(2):
        em = em0 if m == 0 else jnp.logical_not(em0)
        qm = jnp.where(em, q_full, bq_row).astype(cd)
        km = jnp.where(em, k_full, bk_row).astype(cd)
        vm = jnp.where(em, v_full, bv_row).astype(cd)
        masked.append((qm, km, vm))

    # --- heads-outer / experts-inner attention ------------------------------
    ctx_slabs = []
    for h in range(num_heads):
        sl = slice(h * d, (h + 1) * d)
        acc = None                                 # accumulated (masked) probs
        ctx_h = None                               # accumulated context slab (S, d)
        for m in range(2):
            qm, km, vm = masked[m]
            scores = jnp.dot(qm[:, sl], km[:, sl].T,
                             preferred_element_type=jnp.float32)
            scores = scores - jnp.max(scores, axis=-1, keepdims=True)
            e = jnp.exp(scores)
            p = e * pl.reciprocal(jnp.sum(e, axis=-1, keepdims=True), approx=True)

            contrib = p * hm_ref[m, h]
            acc = contrib if acc is None else acc + contrib
            # Module quirk: the context matmul uses the ACCUMULATED probs in
            # BOTH expert iterations, and the contexts are summed.
            cm = jnp.dot(acc.astype(cd), vm[:, sl],
                         preferred_element_type=jnp.float32)
            ctx_h = cm if ctx_h is None else ctx_h + cm

        probs_ref[0, h] = acc                      # single write per (batch, head)
        ctx_slabs.append(ctx_h)

    # Single lane-dense store of the full (S, D) context tile.
    ctx_ref[0] = jnp.concatenate(ctx_slabs, axis=-1)


# ----------------------------------------------------------------------------
# Wrapper
# ----------------------------------------------------------------------------
def bert_self_attention(hidden_states, params, *, threshold, num_heads,
                        compute_dtype=jnp.float32):
    B, S, D = hidden_states.shape
    d = D // num_heads
    inv_sqrt_d = 1.0 / math.sqrt(d)

    hm1 = topk_binarizer(params["headmask_scores_1"], threshold)
    hm2 = topk_binarizer(params["headmask_scores_2"], threshold)
    hm = jnp.stack([hm1, hm2], axis=0)             # (2, H)

    # Fold the 1/sqrt(d) attention scale into the query projection host-side,
    # and fuse Q/K/V weights / biases for a single in-kernel matmul.
    wqkv = jnp.concatenate([params["wq"] * inv_sqrt_d, params["wk"], params["wv"]],
                           axis=1)                                  # (D, 3D)
    bqkv = jnp.concatenate([params["bq"] * inv_sqrt_d, params["bk"], params["bv"]],
                           axis=0).reshape(1, 3 * D)                # (1, 3D)

    kernel = functools.partial(
        bert_self_attention_kernel,
        num_heads=num_heads, head_size=d, hidden=D, compute_dtype=compute_dtype,
    )

    full2d = lambda b: (0, 0)
    in_specs = [
        pl.BlockSpec((1, S, D), lambda b: (b, 0, 0)),                    # hidden_states
        pl.BlockSpec((D, 3 * D), full2d), pl.BlockSpec((1, 3 * D), full2d),  # Wqkv, bqkv
        pl.BlockSpec((D, 2), full2d), pl.BlockSpec((1, 2), full2d),      # Wg, bg
        pl.BlockSpec((2, num_heads), full2d,
                     memory_space=pltpu.MemorySpace.SMEM),               # head masks
    ]
    out_specs = (
        pl.BlockSpec((1, S, D), lambda b: (b, 0, 0)),
        pl.BlockSpec((1, num_heads, S, S), lambda b: (b, 0, 0, 0)),
    )
    out_shapes = (
        jax.ShapeDtypeStruct((B, S, D), jnp.float32),
        jax.ShapeDtypeStruct((B, num_heads, S, S), jnp.float32),
    )

    ctx, probs = pl.pallas_call(
        kernel,
        out_shape=out_shapes,
        grid=(B,),
        in_specs=in_specs,
        out_specs=out_specs,
        compiler_params=pltpu.CompilerParams(dimension_semantics=("parallel",)),
    )(
        hidden_states,
        wqkv, bqkv,
        params["wg"], params["bg"].reshape(1, 2),
        hm,
    )
    return ctx, probs


# ----------------------------------------------------------------------------
# Pure-JAX reference (mirrors the PyTorch forward)
# ----------------------------------------------------------------------------
def reference(hidden_states, params, *, threshold, num_heads):
    B, S, D = hidden_states.shape
    d = D // num_heads
    hm_list = [
        topk_binarizer(params["headmask_scores_1"], threshold),
        topk_binarizer(params["headmask_scores_2"], threshold),
    ]
    g = hidden_states @ params["wg"] + params["bg"]
    sel = jnp.argmax(g, axis=-1)                   # (B, S)

    final_probs = jnp.zeros((B, num_heads, S, S), jnp.float32)
    final_ctx = jnp.zeros((B, S, D), jnp.float32)
    for m, hm in enumerate(hm_list):
        em = (sel == m)[..., None]
        rx = jnp.where(em, hidden_states, 0.0)
        q = rx @ params["wq"] + params["bq"]
        k = rx @ params["wk"] + params["bk"]
        v = rx @ params["wv"] + params["bv"]
        qh = q.reshape(B, S, num_heads, d).transpose(0, 2, 1, 3)
        kh = k.reshape(B, S, num_heads, d).transpose(0, 2, 1, 3)
        vh = v.reshape(B, S, num_heads, d).transpose(0, 2, 1, 3)
        scores = jnp.einsum("bhqd,bhkd->bhqk", qh, kh) / math.sqrt(d)
        probs = jax.nn.softmax(scores, axis=-1)
        final_probs = final_probs + probs * hm[None, :, None, None]
        ctx = jnp.einsum("bhqk,bhkd->bhqd", final_probs, vh)
        ctx = ctx.transpose(0, 2, 1, 3).reshape(B, S, D)
        final_ctx = final_ctx + ctx
    return final_ctx, final_probs


# ----------------------------------------------------------------------------
if __name__ == "__main__":
    # Small config: hidden=32, heads=4 (head_size=8), seq=8, batch=2, threshold=0.5
    B, S, D, H = 2, 8, 32, 4
    threshold = 0.5

    key = jax.random.PRNGKey(0)
    ks = jax.random.split(key, 12)
    scale = 0.1
    params = {
        "wq": jax.random.normal(ks[0], (D, D), jnp.float32) * scale,
        "bq": jax.random.normal(ks[1], (D,), jnp.float32) * scale,
        "wk": jax.random.normal(ks[2], (D, D), jnp.float32) * scale,
        "bk": jax.random.normal(ks[3], (D,), jnp.float32) * scale,
        "wv": jax.random.normal(ks[4], (D, D), jnp.float32) * scale,
        "bv": jax.random.normal(ks[5], (D,), jnp.float32) * scale,
        "wg": jax.random.normal(ks[6], (D, 2), jnp.float32) * scale,
        "bg": jax.random.normal(ks[7], (2,), jnp.float32) * scale,
        "headmask_scores_1": jax.random.normal(ks[8], (H,), jnp.float32),
        "headmask_scores_2": jax.random.normal(ks[9], (H,), jnp.float32),
    }
    hidden_states = jax.random.normal(ks[10], (B, S, D), jnp.float32)

    ref_ctx, ref_probs = reference(
        hidden_states, params, threshold=threshold, num_heads=H
    )

    # f32 MXU path (v5e-friendly, tight tolerance vs reference).
    ctx, probs = bert_self_attention(
        hidden_states, params, threshold=threshold, num_heads=H,
        compute_dtype=jnp.float32,
    )
    jax.block_until_ready((ctx, probs))
    assert ctx.shape == (B, S, D) and probs.shape == (B, H, S, S)
    assert jnp.allclose(ctx, ref_ctx, atol=5e-3, rtol=5e-3), "context mismatch (f32)"
    assert jnp.allclose(probs, ref_probs, atol=5e-3, rtol=5e-3), "probs mismatch (f32)"

    # bf16 MXU-input path (v6e/v7x fast path; f32 accumulation & elementwise).
    ctx_bf, probs_bf = bert_self_attention(
        hidden_states, params, threshold=threshold, num_heads=H,
        compute_dtype=jnp.bfloat16,
    )
    jax.block_until_ready((ctx_bf, probs_bf))
    assert jnp.allclose(ctx_bf, ref_ctx, atol=2e-2, rtol=2e-2), "context mismatch (bf16)"
    assert jnp.allclose(probs_bf, ref_probs, atol=2e-2, rtol=2e-2), "probs mismatch (bf16)"

    print("KERNEL_OK")
</pallas_src>

<mosaic_0001>
module attributes {stable_mosaic.version = 11 : i64} {
  func.func @bert_self_attention_kernel(%arg0: i32, %arg1: memref<1x8x32xf32, #tpu.memory_space<vmem>>, %arg2: memref<32x96xf32, #tpu.memory_space<vmem>>, %arg3: memref<1x96xf32, #tpu.memory_space<vmem>>, %arg4: memref<32x2xf32, #tpu.memory_space<vmem>>, %arg5: memref<1x2xf32, #tpu.memory_space<vmem>>, %arg6: memref<2x4xf32, #tpu.memory_space<smem>>, %arg7: memref<1x8x32xf32, #tpu.memory_space<vmem>>, %arg8: memref<1x4x8x8xf32, #tpu.memory_space<vmem>>) attributes {dimension_semantics = [#tpu.dimension_semantics<parallel>], iteration_bounds = array<i64: 2>, scalar_prefetch = 0 : i64, scratch_operands = 0 : i64, tpu.core_type = #tpu.core_type<tc>, window_params = [{transform_indices = @transform_0, window_bounds = array<i64: 1, 8, 32>}, {pipeline_mode = #tpu.pipeline_mode<synchronous>, transform_indices = @transform_1, window_bounds = array<i64: 32, 96>}, {pipeline_mode = #tpu.pipeline_mode<synchronous>, transform_indices = @transform_2, window_bounds = array<i64: 1, 96>}, {pipeline_mode = #tpu.pipeline_mode<synchronous>, transform_indices = @transform_3, window_bounds = array<i64: 32, 2>}, {pipeline_mode = #tpu.pipeline_mode<synchronous>, transform_indices = @transform_4, window_bounds = array<i64: 1, 2>}, {transform_indices = @transform_5, window_bounds = array<i64: 2, 4>}, {transform_indices = @transform_6, window_bounds = array<i64: 1, 8, 32>}, {transform_indices = @transform_7, window_bounds = array<i64: 1, 4, 8, 8>}]} {
    %c0 = arith.constant 0 : index
    %c0_0 = arith.constant 0 : index
    %c0_1 = arith.constant 0 : index
    %0 = vector.load %arg1[%c0, %c0_0, %c0_1] : memref<1x8x32xf32, #tpu.memory_space<vmem>>, vector<1x8x32xf32>
    %1 = vector.shape_cast %0 : vector<1x8x32xf32> to vector<8x32xf32>
    %c0_2 = arith.constant 0 : index
    %c0_3 = arith.constant 0 : index
    %2 = vector.load %arg4[%c0_2, %c0_3] : memref<32x2xf32, #tpu.memory_space<vmem>>, vector<32x2xf32>
    %cst = arith.constant dense<0.000000e+00> : vector<8x2xf32>
    %3 = tpu.matmul %1, %2, %cst {dimension_numbers = #tpu.dot_dimension_numbers<[1], [0], [0], [1], [0, 0, 1, 1], [], []>} : vector<8x32xf32>, vector<32x2xf32>, vector<8x2xf32> -> vector<8x2xf32>
    %c0_4 = arith.constant 0 : index
    %c0_5 = arith.constant 0 : index
    %4 = vector.load %arg5[%c0_4, %c0_5] : memref<1x2xf32, #tpu.memory_space<vmem>>, vector<1x2xf32>
    %5 = vector.broadcast %4 : vector<1x2xf32> to vector<8x2xf32>
    %6 = arith.addf %3, %5 : vector<8x2xf32>
    %7 = vector.extract_strided_slice %6 {offsets = [0, 0], sizes = [8, 1], strides = [1, 1]} : vector<8x2xf32> to vector<8x1xf32>
    %8 = vector.extract_strided_slice %6 {offsets = [0, 1], sizes = [8, 1], strides = [1, 1]} : vector<8x2xf32> to vector<8x1xf32>
    %9 = arith.cmpf oge, %7, %8 : vector<8x1xf32>
    %c0_6 = arith.constant 0 : index
    %c0_7 = arith.constant 0 : index
    %10 = vector.load %arg2[%c0_6, %c0_7] : memref<32x96xf32, #tpu.memory_space<vmem>>, vector<32x96xf32>
    %cst_8 = arith.constant dense<0.000000e+00> : vector<8x96xf32>
    %11 = tpu.matmul %1, %10, %cst_8 {dimension_numbers = #tpu.dot_dimension_numbers<[1], [0], [0], [1], [0, 0, 1, 1], [], []>} : vector<8x32xf32>, vector<32x96xf32>, vector<8x96xf32> -> vector<8x96xf32>
    %c0_9 = arith.constant 0 : index
    %c0_10 = arith.constant 0 : index
    %12 = vector.load %arg3[%c0_9, %c0_10] : memref<1x96xf32, #tpu.memory_space<vmem>>, vector<1x96xf32>
    %13 = vector.broadcast %12 : vector<1x96xf32> to vector<8x96xf32>
    %14 = arith.addf %11, %13 : vector<8x96xf32>
    %15 = vector.extract_strided_slice %14 {offsets = [0, 0], sizes = [8, 32], strides = [1, 1]} : vector<8x96xf32> to vector<8x32xf32>
    %16 = vector.extract_strided_slice %14 {offsets = [0, 32], sizes = [8, 32], strides = [1, 1]} : vector<8x96xf32> to vector<8x32xf32>
    %17 = vector.extract_strided_slice %14 {offsets = [0, 64], sizes = [8, 32], strides = [1, 1]} : vector<8x96xf32> to vector<8x32xf32>
    %c0_11 = arith.constant 0 : index
    %c0_12 = arith.constant 0 : index
    %18 = vector.load %arg3[%c0_11, %c0_12] : memref<1x96xf32, #tpu.memory_space<vmem>>, vector<1x32xf32>
    %c0_13 = arith.constant 0 : index
    %c32 = arith.constant 32 : index
    %19 = vector.load %arg3[%c0_13, %c32] : memref<1x96xf32, #tpu.memory_space<vmem>>, vector<1x32xf32>
    %c0_14 = arith.constant 0 : index
    %c64 = arith.constant 64 : index
    %20 = vector.load %arg3[%c0_14, %c64] : memref<1x96xf32, #tpu.memory_space<vmem>>, vector<1x32xf32>
    %21 = vector.shape_cast %9 : vector<8x1xi1> to vector<8x1xi1>
    %22 = vector.broadcast %21 : vector<8x1xi1> to vector<8x32xi1>
    %23 = vector.shape_cast %18 : vector<1x32xf32> to vector<1x32xf32>
    %24 = vector.broadcast %23 : vector<1x32xf32> to vector<8x32xf32>
    %25 = arith.select %22, %15, %24 : vector<8x32xi1>, vector<8x32xf32>
    %26 = vector.shape_cast %9 : vector<8x1xi1> to vector<8x1xi1>
    %27 = vector.broadcast %26 : vector<8x1xi1> to vector<8x32xi1>
    %28 = vector.shape_cast %19 : vector<1x32xf32> to vector<1x32xf32>
    %29 = vector.broadcast %28 : vector<1x32xf32> to vector<8x32xf32>
    %30 = arith.select %27, %16, %29 : vector<8x32xi1>, vector<8x32xf32>
    %31 = vector.shape_cast %9 : vector<8x1xi1> to vector<8x1xi1>
    %32 = vector.broadcast %31 : vector<8x1xi1> to vector<8x32xi1>
    %33 = vector.shape_cast %20 : vector<1x32xf32> to vector<1x32xf32>
    %34 = vector.broadcast %33 : vector<1x32xf32> to vector<8x32xf32>
    %35 = arith.select %32, %17, %34 : vector<8x32xi1>, vector<8x32xf32>
    %cst_15 = arith.constant dense<true> : vector<8x1xi1>
    %36 = arith.xori %9, %cst_15 : vector<8x1xi1>
    %37 = vector.shape_cast %36 : vector<8x1xi1> to vector<8x1xi1>
    %38 = vector.broadcast %37 : vector<8x1xi1> to vector<8x32xi1>
    %39 = vector.shape_cast %18 : vector<1x32xf32> to vector<1x32xf32>
    %40 = vector.broadcast %39 : vector<1x32xf32> to vector<8x32xf32>
    %41 = arith.select %38, %15, %40 : vector<8x32xi1>, vector<8x32xf32>
    %42 = vector.shape_cast %36 : vector<8x1xi1> to vector<8x1xi1>
    %43 = vector.broadcast %42 : vector<8x1xi1> to vector<8x32xi1>
    %44 = vector.shape_cast %19 : vector<1x32xf32> to vector<1x32xf32>
    %45 = vector.broadcast %44 : vector<1x32xf32> to vector<8x32xf32>
    %46 = arith.select %43, %16, %45 : vector<8x32xi1>, vector<8x32xf32>
    %47 = vector.shape_cast %36 : vector<8x1xi1> to vector<8x1xi1>
    %48 = vector.broadcast %47 : vector<8x1xi1> to vector<8x32xi1>
    %49 = vector.shape_cast %20 : vector<1x32xf32> to vector<1x32xf32>
    %50 = vector.broadcast %49 : vector<1x32xf32> to vector<8x32xf32>
    %51 = arith.select %48, %17, %50 : vector<8x32xi1>, vector<8x32xf32>
    %52 = vector.extract_strided_slice %25 {offsets = [0, 0], sizes = [8, 8], strides = [1, 1]} : vector<8x32xf32> to vector<8x8xf32>
    %53 = vector.extract_strided_slice %30 {offsets = [0, 0], sizes = [8, 8], strides = [1, 1]} : vector<8x32xf32> to vector<8x8xf32>
    %54 = tpu.transpose %53, [1, 0] : vector<8x8xf32> -> vector<8x8xf32>
    %cst_16 = arith.constant dense<0.000000e+00> : vector<8x8xf32>
    %55 = tpu.matmul %52, %54, %cst_16 {dimension_numbers = #tpu.dot_dimension_numbers<[1], [0], [0], [1], [0, 0, 1, 1], [], []>} : vector<8x8xf32>, vector<8x8xf32>, vector<8x8xf32> -> vector<8x8xf32>
    %cst_17 = arith.constant dense<0xFF800000> : vector<8xf32>
    %56 = vector.multi_reduction <maximumf>, %55, %cst_17 [1] : vector<8x8xf32> to vector<8xf32>
    %57 = vector.shape_cast %56 : vector<8xf32> to vector<8x1xf32>
    %58 = vector.broadcast %57 : vector<8x1xf32> to vector<8x8xf32>
    %59 = arith.subf %55, %58 : vector<8x8xf32>
    %60 = math.exp %59 : vector<8x8xf32>
    %cst_18 = arith.constant dense<0.000000e+00> : vector<8xf32>
    %61 = vector.multi_reduction <add>, %60, %cst_18 [1] : vector<8x8xf32> to vector<8xf32>
    %62 = vector.shape_cast %61 : vector<8xf32> to vector<8x1xf32>
    %63 = tpu.reciprocal %62 {approx = true} : vector<8x1xf32> -> vector<8x1xf32>
    %64 = vector.broadcast %63 : vector<8x1xf32> to vector<8x8xf32>
    %65 = arith.mulf %60, %64 : vector<8x8xf32>
    %c0_19 = arith.constant 0 : index
    %c0_20 = arith.constant 0 : index
    %66 = memref.load %arg6[%c0_19, %c0_20] : memref<2x4xf32, #tpu.memory_space<smem>>
    %67 = vector.broadcast %66 : f32 to vector<8x8xf32>
    %68 = arith.mulf %65, %67 : vector<8x8xf32>
    %69 = vector.extract_strided_slice %35 {offsets = [0, 0], sizes = [8, 8], strides = [1, 1]} : vector<8x32xf32> to vector<8x8xf32>
    %cst_21 = arith.constant dense<0.000000e+00> : vector<8x8xf32>
    %70 = tpu.matmul %68, %69, %cst_21 {dimension_numbers = #tpu.dot_dimension_numbers<[1], [0], [0], [1], [0, 0, 1, 1], [], []>} : vector<8x8xf32>, vector<8x8xf32>, vector<8x8xf32> -> vector<8x8xf32>
    %71 = vector.extract_strided_slice %41 {offsets = [0, 0], sizes = [8, 8], strides = [1, 1]} : vector<8x32xf32> to vector<8x8xf32>
    %72 = vector.extract_strided_slice %46 {offsets = [0, 0], sizes = [8, 8], strides = [1, 1]} : vector<8x32xf32> to vector<8x8xf32>
    %73 = tpu.transpose %72, [1, 0] : vector<8x8xf32> -> vector<8x8xf32>
    %cst_22 = arith.constant dense<0.000000e+00> : vector<8x8xf32>
    %74 = tpu.matmul %71, %73, %cst_22 {dimension_numbers = #tpu.dot_dimension_numbers<[1], [0], [0], [1], [0, 0, 1, 1], [], []>} : vector<8x8xf32>, vector<8x8xf32>, vector<8x8xf32> -> vector<8x8xf32>
    %cst_23 = arith.constant dense<0xFF800000> : vector<8xf32>
    %75 = vector.multi_reduction <maximumf>, %74, %cst_23 [1] : vector<8x8xf32> to vector<8xf32>
    %76 = vector.shape_cast %75 : vector<8xf32> to vector<8x1xf32>
    %77 = vector.broadcast %76 : vector<8x1xf32> to vector<8x8xf32>
    %78 = arith.subf %74, %77 : vector<8x8xf32>
    %79 = math.exp %78 : vector<8x8xf32>
    %cst_24 = arith.constant dense<0.000000e+00> : vector<8xf32>
    %80 = vector.multi_reduction <add>, %79, %cst_24 [1] : vector<8x8xf32> to vector<8xf32>
    %81 = vector.shape_cast %80 : vector<8xf32> to vector<8x1xf32>
    %82 = tpu.reciprocal %81 {approx = true} : vector<8x1xf32> -> vector<8x1xf32>
    %83 = vector.broadcast %82 : vector<8x1xf32> to vector<8x8xf32>
    %84 = arith.mulf %79, %83 : vector<8x8xf32>
    %c1 = arith.constant 1 : index
    %c0_25 = arith.constant 0 : index
    %85 = memref.load %arg6[%c1, %c0_25] : memref<2x4xf32, #tpu.memory_space<smem>>
    %86 = vector.broadcast %85 : f32 to vector<8x8xf32>
    %87 = arith.mulf %84, %86 : vector<8x8xf32>
    %88 = arith.addf %68, %87 : vector<8x8xf32>
    %89 = vector.extract_strided_slice %51 {offsets = [0, 0], sizes = [8, 8], strides = [1, 1]} : vector<8x32xf32> to vector<8x8xf32>
    %cst_26 = arith.constant dense<0.000000e+00> : vector<8x8xf32>
    %90 = tpu.matmul %88, %89, %cst_26 {dimension_numbers = #tpu.dot_dimension_numbers<[1], [0], [0], [1], [0, 0, 1, 1], [], []>} : vector<8x8xf32>, vector<8x8xf32>, vector<8x8xf32> -> vector<8x8xf32>
    %91 = arith.addf %70, %90 : vector<8x8xf32>
    %c0_27 = arith.constant 0 : index
    %c0_28 = arith.constant 0 : index
    %c0_29 = arith.constant 0 : index
    %c0_30 = arith.constant 0 : index
    %92 = vector.load %arg8[%c0_27, %c0_28, %c0_29, %c0_30] : memref<1x4x8x8xf32, #tpu.memory_space<vmem>>, vector<1x1x8x8xf32>
    %93 = vector.shape_cast %92 : vector<1x1x8x8xf32> to vector<8x8xf32>
    %94 = vector.shape_cast %88 : vector<8x8xf32> to vector<1x1x8x8xf32>
    tpu.vector_store %arg8[%c0_27, %c0_28, %c0_29, %c0_30], %94 {strides = array<i32>} : memref<1x4x8x8xf32, #tpu.memory_space<vmem>>, vector<1x1x8x8xf32>,
    %95 = vector.extract_strided_slice %25 {offsets = [0, 8], sizes = [8, 8], strides = [1, 1]} : vector<8x32xf32> to vector<8x8xf32>
    %96 = vector.extract_strided_slice %30 {offsets = [0, 8], sizes = [8, 8], strides = [1, 1]} : vector<8x32xf32> to vector<8x8xf32>
    %97 = tpu.transpose %96, [1, 0] : vector<8x8xf32> -> vector<8x8xf32>
    %cst_31 = arith.constant dense<0.000000e+00> : vector<8x8xf32>
    %98 = tpu.matmul %95, %97, %cst_31 {dimension_numbers = #tpu.dot_dimension_numbers<[1], [0], [0], [1], [0, 0, 1, 1], [], []>} : vector<8x8xf32>, vector<8x8xf32>, vector<8x8xf32> -> vector<8x8xf32>
    %cst_32 = arith.constant dense<0xFF800000> : vector<8xf32>
    %99 = vector.multi_reduction <maximumf>, %98, %cst_32 [1] : vector<8x8xf32> to vector<8xf32>
    %100 = vector.shape_cast %99 : vector<8xf32> to vector<8x1xf32>
    %101 = vector.broadcast %100 : vector<8x1xf32> to vector<8x8xf32>
    %102 = arith.subf %98, %101 : vector<8x8xf32>
    %103 = math.exp %102 : vector<8x8xf32>
    %cst_33 = arith.constant dense<0.000000e+00> : vector<8xf32>
    %104 = vector.multi_reduction <add>, %103, %cst_33 [1] : vector<8x8xf32> to vector<8xf32>
    %105 = vector.shape_cast %104 : vector<8xf32> to vector<8x1xf32>
    %106 = tpu.reciprocal %105 {approx = true} : vector<8x1xf32> -> vector<8x1xf32>
    %107 = vector.broadcast %106 : vector<8x1xf32> to vector<8x8xf32>
    %108 = arith.mulf %103, %107 : vector<8x8xf32>
    %c0_34 = arith.constant 0 : index
    %c1_35 = arith.constant 1 : index
    %109 = memref.load %arg6[%c0_34, %c1_35] : memref<2x4xf32, #tpu.memory_space<smem>>
    %110 = vector.broadcast %109 : f32 to vector<8x8xf32>
    %111 = arith.mulf %108, %110 : vector<8x8xf32>
    %112 = vector.extract_strided_slice %35 {offsets = [0, 8], sizes = [8, 8], strides = [1, 1]} : vector<8x32xf32> to vector<8x8xf32>
    %cst_36 = arith.constant dense<0.000000e+00> : vector<8x8xf32>
    %113 = tpu.matmul %111, %112, %cst_36 {dimension_numbers = #tpu.dot_dimension_numbers<[1], [0], [0], [1], [0, 0, 1, 1], [], []>} : vector<8x8xf32>, vector<8x8xf32>, vector<8x8xf32> -> vector<8x8xf32>
    %114 = vector.extract_strided_slice %41 {offsets = [0, 8], sizes = [8, 8], strides = [1, 1]} : vector<8x32xf32> to vector<8x8xf32>
    %115 = vector.extract_strided_slice %46 {offsets = [0, 8], sizes = [8, 8], strides = [1, 1]} : vector<8x32xf32> to vector<8x8xf32>
    %116 = tpu.transpose %115, [1, 0] : vector<8x8xf32> -> vector<8x8xf32>
    %cst_37 = arith.constant dense<0.000000e+00> : vector<8x8xf32>
    %117 = tpu.matmul %114, %116, %cst_37 {dimension_numbers = #tpu.dot_dimension_numbers<[1], [0], [0], [1], [0, 0, 1, 1], [], []>} : vector<8x8xf32>, vector<8x8xf32>, vector<8x8xf32> -> vector<8x8xf32>
    %cst_38 = arith.constant dense<0xFF800000> : vector<8xf32>
    %118 = vector.multi_reduction <maximumf>, %117, %cst_38 [1] : vector<8x8xf32> to vector<8xf32>
    %119 = vector.shape_cast %118 : vector<8xf32> to vector<8x1xf32>
    %120 = vector.broadcast %119 : vector<8x1xf32> to vector<8x8xf32>
    %121 = arith.subf %117, %120 : vector<8x8xf32>
    %122 = math.exp %121 : vector<8x8xf32>
    %cst_39 = arith.constant dense<0.000000e+00> : vector<8xf32>
    %123 = vector.multi_reduction <add>, %122, %cst_39 [1] : vector<8x8xf32> to vector<8xf32>
    %124 = vector.shape_cast %123 : vector<8xf32> to vector<8x1xf32>
    %125 = tpu.reciprocal %124 {approx = true} : vector<8x1xf32> -> vector<8x1xf32>
    %126 = vector.broadcast %125 : vector<8x1xf32> to vector<8x8xf32>
    %127 = arith.mulf %122, %126 : vector<8x8xf32>
    %c1_40 = arith.constant 1 : index
    %c1_41 = arith.constant 1 : index
    %128 = memref.load %arg6[%c1_40, %c1_41] : memref<2x4xf32, #tpu.memory_space<smem>>
    %129 = vector.broadcast %128 : f32 to vector<8x8xf32>
    %130 = arith.mulf %127, %129 : vector<8x8xf32>
    %131 = arith.addf %111, %130 : vector<8x8xf32>
    %132 = vector.extract_strided_slice %51 {offsets = [0, 8], sizes = [8, 8], strides = [1, 1]} : vector<8x32xf32> to vector<8x8xf32>
    %cst_42 = arith.constant dense<0.000000e+00> : vector<8x8xf32>
    %133 = tpu.matmul %131, %132, %cst_42 {dimension_numbers = #tpu.dot_dimension_numbers<[1], [0], [0], [1], [0, 0, 1, 1], [], []>} : vector<8x8xf32>, vector<8x8xf32>, vector<8x8xf32> -> vector<8x8xf32>
    %134 = arith.addf %113, %133 : vector<8x8xf32>
    %c0_43 = arith.constant 0 : index
    %c1_44 = arith.constant 1 : index
    %c0_45 = arith.constant 0 : index
    %c0_46 = arith.constant 0 : index
    %135 = vector.load %arg8[%c0_43, %c1_44, %c0_45, %c0_46] : memref<1x4x8x8xf32, #tpu.memory_space<vmem>>, vector<1x1x8x8xf32>
    %136 = vector.shape_cast %135 : vector<1x1x8x8xf32> to vector<8x8xf32>
    %137 = vector.shape_cast %131 : vector<8x8xf32> to vector<1x1x8x8xf32>
    tpu.vector_store %arg8[%c0_43, %c1_44, %c0_45, %c0_46], %137 {strides = array<i32>} : memref<1x4x8x8xf32, #tpu.memory_space<vmem>>, vector<1x1x8x8xf32>,
    %138 = vector.extract_strided_slice %25 {offsets = [0, 16], sizes = [8, 8], strides = [1, 1]} : vector<8x32xf32> to vector<8x8xf32>
    %139 = vector.extract_strided_slice %30 {offsets = [0, 16], sizes = [8, 8], strides = [1, 1]} : vector<8x32xf32> to vector<8x8xf32>
    %140 = tpu.transpose %139, [1, 0] : vector<8x8xf32> -> vector<8x8xf32>
    %cst_47 = arith.constant dense<0.000000e+00> : vector<8x8xf32>
    %141 = tpu.matmul %138, %140, %cst_47 {dimension_numbers = #tpu.dot_dimension_numbers<[1], [0], [0], [1], [0, 0, 1, 1], [], []>} : vector<8x8xf32>, vector<8x8xf32>, vector<8x8xf32> -> vector<8x8xf32>
    %cst_48 = arith.constant dense<0xFF800000> : vector<8xf32>
    %142 = vector.multi_reduction <maximumf>, %141, %cst_48 [1] : vector<8x8xf32> to vector<8xf32>
    %143 = vector.shape_cast %142 : vector<8xf32> to vector<8x1xf32>
    %144 = vector.broadcast %143 : vector<8x1xf32> to vector<8x8xf32>
    %145 = arith.subf %141, %144 : vector<8x8xf32>
    %146 = math.exp %145 : vector<8x8xf32>
    %cst_49 = arith.constant dense<0.000000e+00> : vector<8xf32>
    %147 = vector.multi_reduction <add>, %146, %cst_49 [1] : vector<8x8xf32> to vector<8xf32>
    %148 = vector.shape_cast %147 : vector<8xf32> to vector<8x1xf32>
    %149 = tpu.reciprocal %148 {approx = true} : vector<8x1xf32> -> vector<8x1xf32>
    %150 = vector.broadcast %149 : vector<8x1xf32> to vector<8x8xf32>
    %151 = arith.mulf %146, %150 : vector<8x8xf32>
    %c0_50 = arith.constant 0 : index
    %c2 = arith.constant 2 : index
    %152 = memref.load %arg6[%c0_50, %c2] : memref<2x4xf32, #tpu.memory_space<smem>>
    %153 = vector.broadcast %152 : f32 to vector<8x8xf32>
    %154 = arith.mulf %151, %153 : vector<8x8xf32>
    %155 = vector.extract_strided_slice %35 {offsets = [0, 16], sizes = [8, 8], strides = [1, 1]} : vector<8x32xf32> to vector<8x8xf32>
    %cst_51 = arith.constant dense<0.000000e+00> : vector<8x8xf32>
    %156 = tpu.matmul %154, %155, %cst_51 {dimension_numbers = #tpu.dot_dimension_numbers<[1], [0], [0], [1], [0, 0, 1, 1], [], []>} : vector<8x8xf32>, vector<8x8xf32>, vector<8x8xf32> -> vector<8x8xf32>
    %157 = vector.extract_strided_slice %41 {offsets = [0, 16], sizes = [8, 8], strides = [1, 1]} : vector<8x32xf32> to vector<8x8xf32>
    %158 = vector.extract_strided_slice %46 {offsets = [0, 16], sizes = [8, 8], strides = [1, 1]} : vector<8x32xf32> to vector<8x8xf32>
    %159 = tpu.transpose %158, [1, 0] : vector<8x8xf32> -> vector<8x8xf32>
    %cst_52 = arith.constant dense<0.000000e+00> : vector<8x8xf32>
    %160 = tpu.matmul %157, %159, %cst_52 {dimension_numbers = #tpu.dot_dimension_numbers<[1], [0], [0], [1], [0, 0, 1, 1], [], []>} : vector<8x8xf32>, vector<8x8xf32>, vector<8x8xf32> -> vector<8x8xf32>
    %cst_53 = arith.constant dense<0xFF800000> : vector<8xf32>
    %161 = vector.multi_reduction <maximumf>, %160, %cst_53 [1] : vector<8x8xf32> to vector<8xf32>
    %162 = vector.shape_cast %161 : vector<8xf32> to vector<8x1xf32>
    %163 = vector.broadcast %162 : vector<8x1xf32> to vector<8x8xf32>
    %164 = arith.subf %160, %163 : vector<8x8xf32>
    %165 = math.exp %164 : vector<8x8xf32>
    %cst_54 = arith.constant dense<0.000000e+00> : vector<8xf32>
    %166 = vector.multi_reduction <add>, %165, %cst_54 [1] : vector<8x8xf32> to vector<8xf32>
    %167 = vector.shape_cast %166 : vector<8xf32> to vector<8x1xf32>
    %168 = tpu.reciprocal %167 {approx = true} : vector<8x1xf32> -> vector<8x1xf32>
    %169 = vector.broadcast %168 : vector<8x1xf32> to vector<8x8xf32>
    %170 = arith.mulf %165, %169 : vector<8x8xf32>
    %c1_55 = arith.constant 1 : index
    %c2_56 = arith.constant 2 : index
    %171 = memref.load %arg6[%c1_55, %c2_56] : memref<2x4xf32, #tpu.memory_space<smem>>
    %172 = vector.broadcast %171 : f32 to vector<8x8xf32>
    %173 = arith.mulf %170, %172 : vector<8x8xf32>
    %174 = arith.addf %154, %173 : vector<8x8xf32>
    %175 = vector.extract_strided_slice %51 {offsets = [0, 16], sizes = [8, 8], strides = [1, 1]} : vector<8x32xf32> to vector<8x8xf32>
    %cst_57 = arith.constant dense<0.000000e+00> : vector<8x8xf32>
    %176 = tpu.matmul %174, %175, %cst_57 {dimension_numbers = #tpu.dot_dimension_numbers<[1], [0], [0], [1], [0, 0, 1, 1], [], []>} : vector<8x8xf32>, vector<8x8xf32>, vector<8x8xf32> -> vector<8x8xf32>
    %177 = arith.addf %156, %176 : vector<8x8xf32>
    %c0_58 = arith.constant 0 : index
    %c2_59 = arith.constant 2 : index
    %c0_60 = arith.constant 0 : index
    %c0_61 = arith.constant 0 : index
    %178 = vector.load %arg8[%c0_58, %c2_59, %c0_60, %c0_61] : memref<1x4x8x8xf32, #tpu.memory_space<vmem>>, vector<1x1x8x8xf32>
    %179 = vector.shape_cast %178 : vector<1x1x8x8xf32> to vector<8x8xf32>
    %180 = vector.shape_cast %174 : vector<8x8xf32> to vector<1x1x8x8xf32>
    tpu.vector_store %arg8[%c0_58, %c2_59, %c0_60, %c0_61], %180 {strides = array<i32>} : memref<1x4x8x8xf32, #tpu.memory_space<vmem>>, vector<1x1x8x8xf32>,
    %181 = vector.extract_strided_slice %25 {offsets = [0, 24], sizes = [8, 8], strides = [1, 1]} : vector<8x32xf32> to vector<8x8xf32>
    %182 = vector.extract_strided_slice %30 {offsets = [0, 24], sizes = [8, 8], strides = [1, 1]} : vector<8x32xf32> to vector<8x8xf32>
    %183 = tpu.transpose %182, [1, 0] : vector<8x8xf32> -> vector<8x8xf32>
    %cst_62 = arith.constant dense<0.000000e+00> : vector<8x8xf32>
    %184 = tpu.matmul %181, %183, %cst_62 {dimension_numbers = #tpu.dot_dimension_numbers<[1], [0], [0], [1], [0, 0, 1, 1], [], []>} : vector<8x8xf32>, vector<8x8xf32>, vector<8x8xf32> -> vector<8x8xf32>
    %cst_63 = arith.constant dense<0xFF800000> : vector<8xf32>
    %185 = vector.multi_reduction <maximumf>, %184, %cst_63 [1] : vector<8x8xf32> to vector<8xf32>
    %186 = vector.shape_cast %185 : vector<8xf32> to vector<8x1xf32>
    %187 = vector.broadcast %186 : vector<8x1xf32> to vector<8x8xf32>
    %188 = arith.subf %184, %187 : vector<8x8xf32>
    %189 = math.exp %188 : vector<8x8xf32>
    %cst_64 = arith.constant dense<0.000000e+00> : vector<8xf32>
    %190 = vector.multi_reduction <add>, %189, %cst_64 [1] : vector<8x8xf32> to vector<8xf32>
    %191 = vector.shape_cast %190 : vector<8xf32> to vector<8x1xf32>
    %192 = tpu.reciprocal %191 {approx = true} : vector<8x1xf32> -> vector<8x1xf32>
    %193 = vector.broadcast %192 : vector<8x1xf32> to vector<8x8xf32>
    %194 = arith.mulf %189, %193 : vector<8x8xf32>
    %c0_65 = arith.constant 0 : index
    %c3 = arith.constant 3 : index
    %195 = memref.load %arg6[%c0_65, %c3] : memref<2x4xf32, #tpu.memory_space<smem>>
    %196 = vector.broadcast %195 : f32 to vector<8x8xf32>
    %197 = arith.mulf %194, %196 : vector<8x8xf32>
    %198 = vector.extract_strided_slice %35 {offsets = [0, 24], sizes = [8, 8], strides = [1, 1]} : vector<8x32xf32> to vector<8x8xf32>
    %cst_66 = arith.constant dense<0.000000e+00> : vector<8x8xf32>
    %199 = tpu.matmul %197, %198, %cst_66 {dimension_numbers = #tpu.dot_dimension_numbers<[1], [0], [0], [1], [0, 0, 1, 1], [], []>} : vector<8x8xf32>, vector<8x8xf32>, vector<8x8xf32> -> vector<8x8xf32>
    %200 = vector.extract_strided_slice %41 {offsets = [0, 24], sizes = [8, 8], strides = [1, 1]} : vector<8x32xf32> to vector<8x8xf32>
    %201 = vector.extract_strided_slice %46 {offsets = [0, 24], sizes = [8, 8], strides = [1, 1]} : vector<8x32xf32> to vector<8x8xf32>
    %202 = tpu.transpose %201, [1, 0] : vector<8x8xf32> -> vector<8x8xf32>
    %cst_67 = arith.constant dense<0.000000e+00> : vector<8x8xf32>
    %203 = tpu.matmul %200, %202, %cst_67 {dimension_numbers = #tpu.dot_dimension_numbers<[1], [0], [0], [1], [0, 0, 1, 1], [], []>} : vector<8x8xf32>, vector<8x8xf32>, vector<8x8xf32> -> vector<8x8xf32>
    %cst_68 = arith.constant dense<0xFF800000> : vector<8xf32>
    %204 = vector.multi_reduction <maximumf>, %203, %cst_68 [1] : vector<8x8xf32> to vector<8xf32>
    %205 = vector.shape_cast %204 : vector<8xf32> to vector<8x1xf32>
    %206 = vector.broadcast %205 : vector<8x1xf32> to vector<8x8xf32>
    %207 = arith.subf %203, %206 : vector<8x8xf32>
    %208 = math.exp %207 : vector<8x8xf32>
    %cst_69 = arith.constant dense<0.000000e+00> : vector<8xf32>
    %209 = vector.multi_reduction <add>, %208, %cst_69 [1] : vector<8x8xf32> to vector<8xf32>
    %210 = vector.shape_cast %209 : vector<8xf32> to vector<8x1xf32>
    %211 = tpu.reciprocal %210 {approx = true} : vector<8x1xf32> -> vector<8x1xf32>
    %212 = vector.broadcast %211 : vector<8x1xf32> to vector<8x8xf32>
    %213 = arith.mulf %208, %212 : vector<8x8xf32>
    %c1_70 = arith.constant 1 : index
    %c3_71 = arith.constant 3 : index
    %214 = memref.load %arg6[%c1_70, %c3_71] : memref<2x4xf32, #tpu.memory_space<smem>>
    %215 = vector.broadcast %214 : f32 to vector<8x8xf32>
    %216 = arith.mulf %213, %215 : vector<8x8xf32>
    %217 = arith.addf %197, %216 : vector<8x8xf32>
    %218 = vector.extract_strided_slice %51 {offsets = [0, 24], sizes = [8, 8], strides = [1, 1]} : vector<8x32xf32> to vector<8x8xf32>
    %cst_72 = arith.constant dense<0.000000e+00> : vector<8x8xf32>
    %219 = tpu.matmul %217, %218, %cst_72 {dimension_numbers = #tpu.dot_dimension_numbers<[1], [0], [0], [1], [0, 0, 1, 1], [], []>} : vector<8x8xf32>, vector<8x8xf32>, vector<8x8xf32> -> vector<8x8xf32>
    %220 = arith.addf %199, %219 : vector<8x8xf32>
    %c0_73 = arith.constant 0 : index
    %c3_74 = arith.constant 3 : index
    %c0_75 = arith.constant 0 : index
    %c0_76 = arith.constant 0 : index
    %221 = vector.load %arg8[%c0_73, %c3_74, %c0_75, %c0_76] : memref<1x4x8x8xf32, #tpu.memory_space<vmem>>, vector<1x1x8x8xf32>
    %222 = vector.shape_cast %221 : vector<1x1x8x8xf32> to vector<8x8xf32>
    %223 = vector.shape_cast %217 : vector<8x8xf32> to vector<1x1x8x8xf32>
    tpu.vector_store %arg8[%c0_73, %c3_74, %c0_75, %c0_76], %223 {strides = array<i32>} : memref<1x4x8x8xf32, #tpu.memory_space<vmem>>, vector<1x1x8x8xf32>,
    %224 = tpu.concatenate %91, %134, %177, %220 in 1 : vector<8x8xf32>, vector<8x8xf32>, vector<8x8xf32>, vector<8x8xf32> -> vector<8x32xf32>
    %c0_77 = arith.constant 0 : index
    %c0_78 = arith.constant 0 : index
    %c0_79 = arith.constant 0 : index
    %225 = vector.load %arg7[%c0_77, %c0_78, %c0_79] : memref<1x8x32xf32, #tpu.memory_space<vmem>>, vector<1x8x32xf32>
    %226 = vector.shape_cast %225 : vector<1x8x32xf32> to vector<8x32xf32>
    %227 = vector.shape_cast %224 : vector<8x32xf32> to vector<1x8x32xf32>
    tpu.vector_store %arg7[%c0_77, %c0_78, %c0_79], %227 {strides = array<i32>} : memref<1x8x32xf32, #tpu.memory_space<vmem>>, vector<1x8x32xf32>,
    return
  }
  func.func @transform_0(%arg0: i32) -> (i32, i32, i32) {
    %c0_i32 = arith.constant 0 : i32
    %c0_i32_0 = arith.constant 0 : i32
    %c0_i32_1 = arith.constant 0 : i32
    return %arg0, %c0_i32, %c0_i32_0 : i32, i32, i32
  }
  func.func @transform_1(%arg0: i32) -> (i32, i32) {
    %c0_i32 = arith.constant 0 : i32
    %c0_i32_0 = arith.constant 0 : i32
    %c0_i32_1 = arith.constant 0 : i32
    return %c0_i32, %c0_i32_0 : i32, i32
  }
  func.func @transform_2(%arg0: i32) -> (i32, i32) {
    %c0_i32 = arith.constant 0 : i32
    %c0_i32_0 = arith.constant 0 : i32
    %c0_i32_1 = arith.constant 0 : i32
    return %c0_i32, %c0_i32_0 : i32, i32
  }
  func.func @transform_3(%arg0: i32) -> (i32, i32) {
    %c0_i32 = arith.constant 0 : i32
    %c0_i32_0 = arith.constant 0 : i32
    %c0_i32_1 = arith.constant 0 : i32
    return %c0_i32, %c0_i32_0 : i32, i32
  }
  func.func @transform_4(%arg0: i32) -> (i32, i32) {
    %c0_i32 = arith.constant 0 : i32
    %c0_i32_0 = arith.constant 0 : i32
    %c0_i32_1 = arith.constant 0 : i32
    return %c0_i32, %c0_i32_0 : i32, i32
  }
  func.func @transform_5(%arg0: i32) -> (i32, i32) {
    %c0_i32 = arith.constant 0 : i32
    %c0_i32_0 = arith.constant 0 : i32
    %c0_i32_1 = arith.constant 0 : i32
    return %c0_i32, %c0_i32_0 : i32, i32
  }
  func.func @transform_6(%arg0: i32) -> (i32, i32, i32) {
    %c0_i32 = arith.constant 0 : i32
    %c0_i32_0 = arith.constant 0 : i32
    %c0_i32_1 = arith.constant 0 : i32
    return %arg0, %c0_i32, %c0_i32_0 : i32, i32, i32
  }
  func.func @transform_7(%arg0: i32) -> (i32, i32, i32, i32) {
    %c0_i32 = arith.constant 0 : i32
    %c0_i32_0 = arith.constant 0 : i32
    %c0_i32_1 = arith.constant 0 : i32
    %c0_i32_2 = arith.constant 0 : i32
    return %arg0, %c0_i32, %c0_i32_0, %c0_i32_1 : i32, i32, i32, i32
  }
}

</mosaic_0001>

<bundles_post_ra>
// kernel: tpu_custom_call.1
= control target key start
LH: loop header
LB: loop body
LE: loop exit
PB: predicated region body
PF: predicated region fallthrough
CT: control target
= control target key end

     0   :  { %13 = vsyncpa [#allocation3], 0  ;;  %s3015_s0 = inlined_call_operand.hbm [shape: f32[2,8,32], index: 0, kind: input, shape index: {}]   ;;  %s3016_s1 = inlined_call_operand.vmem [shape: f32[32,96], index: 1, kind: input, shape index: {}]   ;;  %s3017_s2 = inlined_call_operand.vmem [shape: f32[1,96], index: 2, kind: input, shape index: {}]   ;;  %s3018_s3 = inlined_call_operand.vmem [shape: f32[32,2], index: 3, kind: input, shape index: {}]   ;;  %s3019_s4 = inlined_call_operand.vmem [shape: f32[1,2], index: 4, kind: input, shape index: {}]   ;;  %s3020_s5 = inlined_call_operand.vmem [shape: f32[2,4], index: 5, kind: input, shape index: {}]   ;;  %s3021_s6 = inlined_call_operand.hbm [shape: f32[2,8,32], index: 6, kind: output, shape index: {0}]   ;;  %s3022_s7 = inlined_call_operand.hbm [shape: f32[2,4,8,8], index: 7, kind: output, shape index: {1}]  }
   0x1   :  { %15 = vsyncpa [#allocation3 + $0x1], 0 }
   0x2   :  { %16 = vsyncpa [#allocation5], 0 }
   0x3   :  { %17 = vsyncpa [#allocation4], 0 }
   0x4   :  { %19 = vsyncpa [#allocation4 + $0x1], 0 }
   0x5   :  { %20 = vsyncpa [#allocation9], 0 }
   0x6   :  { %22 = vsyncpa [#allocation9 + $0x1], 0  ;;  %s2577_s24 = smov 0   ;;  %s2579_s25 = smov 0  }
   0x7   :  { %s2581_s26 = smov 0   ;;  %s2583_s27 = smov 0  }
   0x8 LB: > { %s2598_s28 = sadd.s32 4294967295, %s2510_s27   ;;  %s2025_s29 = sadd.s32 4294967294, %s2510_s27   ;;  %s2510_s27 = sphi %s2583_s27, %s3043_s27   ;;  %s2506_s26 = sphi %s2581_s26, %s3042_s26   ;;  %s2502_s25 = sphi %s2579_s25, %s3041_s25   ;;  %s2498_s24 = sphi %s2577_s24, %s3040_s24  }
   0x9   : > { %p48_p0 = scmp.ne.s32.totalorder %s2502_s25, %s2498_s24  ;;  %p3023_p1 = scmp.eq.s32.totalorder %s2598_s28, 0 }
   0xa   : > { %p183_p3 = scmp.eq.s32.totalorder %s2025_s29, 1  ;;  %p2026_p5 = scmp.ge.s32.totalorder %s2510_s27, 1 }
   0xb   : > { %p2607_p4 = por %p3023_p1, %p48_p0  ;;  %p216_p7 = scmp.lt.s32.totalorder %s2510_s27, 3 }
   0xc   : > { %p2612_p6 = por %p183_p3, %p48_p0  ;;  %s241_s11 = sshll.u32 %s3020_s5, 4  ;;  %s242_s11 = int_to_ptr.vmem [resolvable:$true] %s241_s11 }
   0xd   : > { %s3026_s30 = scalar_select %p2607_p4, 1, 0 }
   0xe   : > { %s3027_s8 = scalar_select %p2612_p6, 1, 0 }
   0xf   : > { %p2620_p8 = pnand %p2026_p5, %p216_p7  ;;  %s2628_s13 = sadd.s32 1, %s2510_s27  }
  0x10   : > { %s32_s15 = ssub.s32 %s2510_s27, %s2628_s13  ;;  %s35_s17 = sadd.s32 1, %s2506_s26 }
  0x11   : > { %p2256_p10 = pneg %p2620_p8  ;;  %p2638_p12 = scmp.eq.s32.totalorder %s32_s15, 0 }
  0x12   : > { %p42_p13 = scmp.ne.s32.totalorder %s2506_s26, %s2502_s25  ;;  %s2363_s18 = scalar_lea.vmem %s242_s11, 32 }
  0x13   : > { %p2632_p11 = pnand %p2256_p10, %p3023_p1  ;;  %p2364_p0 = scmp.ne.s32.totalorder %s242_s11, %s2363_s18 }
  0x14   : > { %p2371_p9 = scmp.lt.s32.totalorder %s242_s11, %s242_s11  ;;  %p2372_p2 = scmp.lt.s32.totalorder %s2363_s18, %s2363_s18 }
  0x15   : > { %p2365_p3 = pneg %p2632_p11 }
  0x16   : > { %p2373_p10 = por %p2372_p2, %p2371_p9 }
  0x17   : > { %p2366_p5 = pnand %p2365_p3, %p2364_p0 }
  0x19   : > { %p2367_p7 = pneg %p2366_p5 }
  0x1b   : > { %p2374_p1 = pnand %p2373_p10, %p2367_p7 }
  0x1d   : > { %2377 = shalt.err (!%p2374_p1)
}
  0x1e   : > { %s2512_s19 = smov [#allocation6]   ;;  %p43_p2 = scmp.eq.s32.totalorder %s2510_s27, 0 }
  0x1f   : > { %2259 = dma.vmem_to_smem (!%p2632_p11), %s242_s11, 32, %s2512_s19, [#allocation5]  }
  0x20   : > { %s2652_s20 = scalar_select %p2638_p12, %s2506_s26, %s35_s17  }
  0x21   : > { %p3031_p1 = scmp.eq.s32.totalorder %s2598_s28, 1  ;;  %p2272_p0 = scmp.lt.s32.totalorder %s2510_s27, 2 }
  0x22   : > { %s252_s22 = sand.u32 1, %s2506_s26   ;;  %p44_p3 = por %p43_p2, %p42_p13 }
  0x23   : > { %p2660_p9 = por %p3031_p1, %p42_p13  ;;  %s2029_s23 = sshll.u32 %s252_s22, 3 }
  0x24   : > { %s2030_s29 = sshll.u32 %s2510_s27, 7  ;;  %s256_s14 = scalar_lea.vmem [#allocation2], %s2029_s23 }
  0x25   : > { %s3032_s21 = scalar_select %p2660_p9, 1, 0 }
  0x26   : > { %s2673_s11 = scalar_lea.hbm %s3015_s0, %s2030_s29  ;;  %s263_s15 = sshll.u32 %s256_s14, 4  ;;  %s2679_s15 = int_to_ptr.vmem [resolvable:$true] %s263_s15 }
  0x27   : > { %p2675_p11 = pnand %p2272_p0, %p44_p3  ;;  %s253_s17 = scalar_lea.sflag [#allocation3], %s252_s22 }
  0x28   : > { %s2378_s18 = scalar_lea.hbm %s2673_s11, 128  ;;  %s2383_s29 = scalar_lea.hbm %s3015_s0, 256 }
  0x29   : > { %p2379_p12 = scmp.ne.s32.totalorder %s2673_s11, %s2378_s18  ;;  %p2380_p13 = pneg %p2675_p11 }
  0x2a   : > { %p2384_p10 = scmp.lt.u32.totalorder %s2673_s11, %s3015_s0  ;;  %p2385_p2 = scmp.lt.u32.totalorder %s2383_s29, %s2378_s18 }
  0x2b   : > { %p2381_p5 = pnand %p2380_p13, %p2379_p12  ;;  %p2387_p0 = scmp.lt.u32.totalorder %s2378_s18, %s2673_s11 }
  0x2c   : > { %p2386_p1 = por %p2385_p2, %p2384_p10 }
  0x2d   : > { %p2382_p7 = pneg %p2381_p5 }
  0x2e   : > { %p2388_p3 = por %p2387_p0, %p2386_p1 }
  0x30   : > { %p2389_p6 = pnand %p2388_p3, %p2382_p7 }
  0x32   : > { %2392 = shalt.err (!%p2389_p6)
}
  0x33   : > { %s2393_s22 = scalar_lea.vmem %s2679_s15, 128  ;;  %s2513_s14 = smov [#allocation2]  }
  0x34   : > { %p2394_p12 = scmp.ne.s32.totalorder %s2679_s15, %s2393_s22  ;;  %s2398_s19 = sshll.u32 %s2513_s14, 4  ;;  %s2399_s19 = int_to_ptr.vmem [resolvable:$false] %s2398_s19 }
  0x35   : > { %s2400_s23 = scalar_lea.vmem %s2399_s19, 256  ;;  %p2401_p4 = scmp.lt.s32.totalorder %s2679_s15, %s2399_s19 }
  0x36   : > { %p2396_p5 = pnand %p2394_p12, %p2380_p13  ;;  %p2402_p10 = scmp.lt.s32.totalorder %s2400_s23, %s2393_s22 }
  0x38   : > { %p2397_p9 = pneg %p2396_p5  ;;  %p2403_p2 = por %p2402_p10, %p2401_p4 }
  0x3a   : > { %p2404_p1 = pnand %p2403_p2, %p2397_p9 }
  0x3c   : > { %2407 = shalt.err (!%p2404_p1)
}
  0x3d   : > { %2263 = dma.hbm_to_vmem [thread:$0]  (!%p2675_p11), %s2673_s11, 128, %s2679_s15, %s253_s17  }
  0x3e   : > { %272 = sbr.rel (%p2620_p8) target bundleno = 1622 (0x656), region = 44  ;;  %s2709_s18 = sand.u32 (!%p2620_p8), 1, %s2502_s25  }
  0x3f   : > { %s2032_s29 = sshll.u32 (!%p2620_p8), %s2709_s18, 3  ;;  %s275_s9 = scalar_lea.sflag (!%p2620_p8), [#allocation3], %s2709_s18 }
  0x40   : > { %s278_s10 = scalar_lea.vmem (!%p2620_p8), [#allocation2], %s2032_s29  ;;  %p3034_p4 = scmp.ne.s32.totalorder (!%p2620_p8), %s3026_s30, 0 }
  0x45   : > { %2481 = dma.done.wait (%p3034_p4), %s275_s9, 128  }
  0x46   : > { %2483 = vsyncadd (%p3034_p4), %s275_s9, 4294967168  ;;  %p3035_p6 = scmp.eq.s32.totalorder %s2598_s28, 0 }
  0x48   : > { %2485 = dma.done.wait (%p3035_p6), [#allocation5], 32   ;;  %p3036_p8 = pmov %p3035_p6 }
  0x4a   : > { %2487 = vsyncadd (%p3036_p8), [#allocation5], 4294967264 }
  0x4b   : > { %287 = sfence }
  0x4c   : > { %v320_v0 = vld [vmem:[%s3018_s3] sm:$0xff]  ;;  %v321_v1 = vld [vmem:[%s3018_s3 + $0x8] sm:$0xff]  ;;  %v322_v2 = vld [vmem:[%s3018_s3 + $0x10] sm:$0xff]  ;;  %v2514_v3 = vmov 0.0|0.0   ;;  %vm2515_vm0 = vmmov 0   ;;  %v2516_v6 = vmov 0.0  }
  0x4d   : > { %2226 = vmatprep.subr.bf16.mxu0 %v2514_v3  ;;  %v2227_v4 = vpack.c.bf16 %v321_v1, %v320_v0  ;;  %v323_v5 = vld [vmem:[%s3018_s3 + $0x18] sm:$0xff]  ;;  %2132 = vmatprep.mubr.msk.f32.mxu0 %vm2515_vm0, %v2516_v6  ;;  %v319_v8 = vld [vmem:[%s278_s10] sm:$0xff]  ;;  %vm331_vm1 = vcmask 261120   ;;  %v412_v11 = vld [vmem:[%s3016_s1 + $0x10] sm:$0xff]  ;;  %v2517_v14 = vmov 0   ;;  %s2518_s30 = smov 127  }
  0x4e   : > { %2232 = vmatprep.subr.bf16.mxu1 %v2514_v3  ;;  %2143 = vmatprep.mubr.msk.f32.mxu1 %vm2515_vm0, %v2516_v6  ;;  %v2230_v7 = vpack.c.bf16 %v323_v5, %v322_v2  ;;  %v410_v9 = vld [vmem:[%s3016_s1] sm:$0xff]  ;;  %v411_v10 = vld [vmem:[%s3016_s1 + $0x8] sm:$0xff]  ;;  %v413_v13 = vld [vmem:[%s3016_s1 + $0x18] sm:$0xff]  ;;  %vm2519_vm3 = vmmov 1   ;;  %s2520_s23 = smov 88   ;;  %s2521_s9 = smov 96  }
  0x4f   : > { %2228 = vmatpush3.bf16.msra.mxu0 %v2227_v4  ;;  %v2233_v12 = vpack.c.bf16 %v411_v10, %v410_v9  ;;  %2329 = vset.pattern.permute.xlu0 %v2517_v14  ;;  %v2236_v15 = vpack.c.bf16 %v413_v13, %v412_v11  ;;  %v2036_v16 = vld [vmem:[%s3019_s4] ss:$0 sm:$0xff]  ;;  %s2522_s12 = smov 80   ;;  %s2523_s11 = smov 120   ;;  %vm507_vm7 = vcmask 64512  }
  0x50   : > { %2229 = vmatprep.subr.bf16.mxu0 %v2514_v3  ;;  %2330 = vset.pattern.permute.xlu1 %v2517_v14  ;;  %v2038_v25 = vld [vmem:[%s3017_s2] ss:$0 sm:$0xff]  ;;  %s2524_s15 = smov 72   ;;  %s2525_s10 = smov 112  }
  0x51   : > { %2234 = vmatpush3.bf16.msra.mxu1 %v2233_v12  ;;  %s2526_s16 = smov 104   ;;  %s2527_s17 = smov 64  }
  0x52   : > { %2235 = vmatprep.subr.bf16.mxu1 %v2514_v3  ;;  %s2528_s22 = smov 56   ;;  %s2530_s14 = smov 40  }
  0x53   : > { %2231 = vmatpush3.bf16.msra.mxu0 %v2230_v7  ;;  %s593_s19 = sld [smem:[#allocation6]]  ;;  %p3037_p11 = scmp.ne.s32.totalorder %s3032_s21, 0 }
  0x54   : > { %2156 = vmatprep.subr.mxu0 %v2516_v6 }
  0x55   : > { %2237 = vmatpush3.bf16.msra.mxu1 %v2236_v15 }
  0x56   : > { %2133 = vmatmul.mubr.msk.f32.vlgmr.msra.gmra.mrb[0].mxu0 %vm331_vm1, %v319_v8  ;;  %2146 = vmatprep.subr.mxu1 %v2516_v6 }
  0x57   : > { %2158 = vmatprep.mubr.msk.f32.mxu0 %vm2515_vm0, %v2516_v6 }
  0x58   : > { %2144 = vmatmul.mubr.msk.f32.vlgmr.msra.gmra.mrb[0].mxu1 %vm331_vm1, %v319_v8 }
  0x59   : > { %2148 = vmatprep.mubr.msk.f32.mxu1 %vm2515_vm0, %v2516_v6 }
 0x129   : > { %v401_v17 = vpop.f32.mrb[0].mxu0 }
 0x12a   : > { %v402_v18 = vadd.f32 %v2036_v16, %v401_v17  ;;  %v2134_v19 = vpop.f32.mrb[1].mxu0 }
 0x12b   : > { %v487_v20 = vpop.f32.mrb[0].mxu1 }
 0x12c   : > { %406 = vrot.lane.b32.xlu0 %v402_v18, %s2518_s30  ;;  %v2145_v21 = vpop.f32.mrb[1].mxu1  ;;  %v488_v26 = vadd.f32 %v2038_v25, %v487_v20  ;;  %s2529_s30 = smov 48  }
 0x19e   : > { %v407_v22 = vpop.permute.xlu0 %406 }
 0x19f   : > { %vm409_vm2 = vcmp.ge.f32.partialorder %v402_v18, %v407_v22 }
 0x1a0   : > { %v491_v23 = vsel %vm409_vm2, 1, %v2517_v14  ;;  %vm497_vm4 = vmxor %vm409_vm2, %vm2519_vm3 }
 0x1a1   : > { %493 = vperm.xlu0 %2329, %v491_v23   ;;  %v498_v24 = vsel %vm497_vm4, 1, %v2517_v14 }
 0x1a2   : > { %500 = vperm.xlu1 %2330, %v498_v24  }
 0x220   : > { %v494_v27 = vpop.permute.xlu0 %493 }
 0x221   : > { %vm495_vm5 = vcmp.eq.s32.totalorder %v494_v27, 1  ;;  %v501_v28 = vpop.permute.xlu1 %500 }
 0x222   : > { %v2765_v29 = vsel %vm495_vm5, %v488_v26, %v2038_v25  ;;  %vm502_vm6 = vcmp.eq.s32.totalorder %v501_v28, 1 }
 0x223   : > { %843 = vrot.lane.b32.xlu0 %v2765_v29, %s2520_s23  ;;  %505 = vrot.lane.b32.xlu1 %v2765_v29, %s2521_s9  ;;  %v2769_v30 = vsel %vm502_vm6, %v488_v26, %v2038_v25 }
 0x227   : > { %935 = vrot.lane.b32.xlu0 %v2769_v30, %s2520_s23  ;;  %597 = vrot.lane.b32.xlu1 %v2769_v30, %s2521_s9  ;;  %s2044_s23 = sld [smem:[#allocation6 + $0x80]]  ;;  %s2049_s9 = sld [smem:[#allocation6 + $0x1]] }
 0x22b   : > { %1182 = vrot.lane.b32.xlu0 %v2765_v29, %s2522_s12  ;;  %841 = vrot.lane.b32.xlu1 %v2765_v29, %s2523_s11 }
 0x22f   : > { %1274 = vrot.lane.b32.xlu0 %v2769_v30, %s2522_s12  ;;  %933 = vrot.lane.b32.xlu1 %v2769_v30, %s2523_s11  ;;  %s2052_s12 = sld [smem:[#allocation6 + $0x81]]  ;;  %s2035_s11 = sshll.u32 %s2709_s18, 5 }
 0x233   : > { %1521 = vrot.lane.b32.xlu0 %v2765_v29, %s2524_s15  ;;  %1180 = vrot.lane.b32.xlu1 %v2765_v29, %s2525_s10 }
 0x237   : > { %1613 = vrot.lane.b32.xlu0 %v2769_v30, %s2524_s15  ;;  %1272 = vrot.lane.b32.xlu1 %v2769_v30, %s2525_s10  ;;  %s2886_s15 = scalar_lea.vmem [#allocation8], %s2035_s11  ;;  %s2058_s10 = sld [smem:[#allocation6 + $0x2]] }
 0x23b   : > { %1519 = vrot.lane.b32.xlu1 %v2765_v29, %s2526_s16 }
 0x23f   : > { %1611 = vrot.lane.b32.xlu1 %v2769_v30, %s2526_s16  ;;  %s2061_s16 = sld [smem:[#allocation6 + $0x82]] }
 0x295   : > { %v844_v31 = vpop.permute.xlu0 %843  ;;  %v506_v32 = vpop.permute.xlu1 %505 }
 0x296   : > { %2147 = vmatpush3.xpose.msk.msra.mxu1 %vm507_vm7, %v506_v32 }
 0x297   : > { %2151 = vmatprep.subr.mxu1 %v2516_v6 }
 0x299   : > { %v936_v33 = vpop.permute.xlu0 %935  ;;  %2149 = vmatmul.mubr.msk.f32.vlgmr.msra.gmra.mrb[2].mxu1 %vm507_vm7, %v2765_v29  ;;  %v598_v34 = vpop.permute.xlu1 %597 }
 0x29a   : > { %2152 = vmatpush3.xpose.msk.msra.mxu1 %vm507_vm7, %v598_v34  ;;  %2153 = vmatprep.mubr.msk.f32.mxu1 %vm2515_vm0, %v2516_v6 }
 0x29b   : > { %2166 = vmatprep.subr.mxu1 %v2516_v6 }
 0x29d   : > { %2154 = vmatmul.mubr.msk.f32.vlgmr.msra.gmra.mrb[4].mxu1 %vm507_vm7, %v2769_v30  ;;  %v842_v35 = vpop.permute.xlu1 %841  ;;  %v1183_v36 = vpop.permute.xlu0 %1182 }
 0x29e   : > { %2167 = vmatpush3.xpose.msk.msra.mxu1 %vm507_vm7, %v844_v31  ;;  %2168 = vmatprep.mubr.msk.f32.mxu1 %vm2515_vm0, %v2516_v6 }
 0x29f   : > { %2171 = vmatprep.subr.mxu1 %v2516_v6 }
 0x2a1   : > { %2169 = vmatmul.mubr.msk.f32.vlgmr.msra.gmra.mrb[6].mxu1 %vm507_vm7, %v842_v35  ;;  %v934_v37 = vpop.permute.xlu1 %933  ;;  %v1275_v38 = vpop.permute.xlu0 %1274 }
 0x2a2   : > { %2172 = vmatpush3.xpose.msk.msra.mxu1 %vm507_vm7, %v936_v33  ;;  %2173 = vmatprep.mubr.msk.f32.mxu1 %vm2515_vm0, %v2516_v6 }
 0x2a3   : > { %2186 = vmatprep.subr.mxu1 %v2516_v6 }
 0x2a5   : > { %2174 = vmatmul.mubr.msk.f32.vlgmr.msra.gmra.mrb[8].mxu1 %vm507_vm7, %v934_v37  ;;  %v1181_v39 = vpop.permute.xlu1 %1180  ;;  %v1522_v41 = vpop.permute.xlu0 %1521 }
 0x2a6   : > { %2187 = vmatpush3.xpose.msk.msra.mxu1 %vm507_vm7, %v1183_v36  ;;  %2188 = vmatprep.mubr.msk.f32.mxu1 %vm2515_vm0, %v2516_v6 }
 0x2a7   : > { %2191 = vmatprep.subr.mxu1 %v2516_v6 }
 0x2a9   : > { %2189 = vmatmul.mubr.msk.f32.vlgmr.msra.gmra.mrb[10].mxu1 %vm507_vm7, %v1181_v39  ;;  %v1273_v40 = vpop.permute.xlu1 %1272  ;;  %v1614_v43 = vpop.permute.xlu0 %1613 }
 0x2aa   : > { %2192 = vmatpush3.xpose.msk.msra.mxu1 %vm507_vm7, %v1275_v38  ;;  %2193 = vmatprep.mubr.msk.f32.mxu1 %vm2515_vm0, %v2516_v6 }
 0x2ab   : > { %2206 = vmatprep.subr.mxu1 %v2516_v6 }
 0x2ad   : > { %2194 = vmatmul.mubr.msk.f32.vlgmr.msra.gmra.mrb[12].mxu1 %vm507_vm7, %v1273_v40  ;;  %v1520_v42 = vpop.permute.xlu1 %1519 }
 0x2ae   : > { %2207 = vmatpush3.xpose.msk.msra.mxu1 %vm507_vm7, %v1522_v41  ;;  %2208 = vmatprep.mubr.msk.f32.mxu1 %vm2515_vm0, %v2516_v6 }
 0x2af   : > { %2211 = vmatprep.subr.mxu1 %v2516_v6 }
 0x2b1   : > { %2209 = vmatmul.mubr.msk.f32.vlgmr.msra.gmra.mrb[14].mxu1 %vm507_vm7, %v1520_v42  ;;  %v1612_v44 = vpop.permute.xlu1 %1611 }
 0x2b2   : > { %2212 = vmatpush3.xpose.msk.msra.mxu1 %vm507_vm7, %v1614_v43  ;;  %2213 = vmatprep.mubr.msk.f32.mxu1 %vm2515_vm0, %v2516_v6 }
 0x2b5   : > { %2214 = vmatmul.mubr.msk.f32.vlgmr.msra.gmra.mrb[16].mxu1 %vm507_vm7, %v1612_v44 }
 0x36c   : > { %v578_v45 = vpop.f32.mrb[2].mxu1 }
 0x36d   : > { %v2150_v46 = vpop.f32.mrb[3].mxu1  ;;  %v582_v47 = vsel %vm507_vm7, %v578_v45, -inf }
 0x36e   : > { %583 = vmax.xlane.f32.xlu0 %v582_v47 }
 0x370   : > { %v669_v48 = vpop.f32.mrb[4].mxu1 }
 0x371   : > { %v2155_v49 = vpop.f32.mrb[5].mxu1  ;;  %v673_v50 = vsel %vm507_vm7, %v669_v48, -inf }
 0x372   : > { %674 = vmax.xlane.f32.xlu1 %v673_v50 }
 0x374   : > { %v915_v51 = vpop.f32.mrb[6].mxu1 }
 0x375   : > { %v2170_v52 = vpop.f32.mrb[7].mxu1  ;;  %v919_v53 = vsel %vm507_vm7, %v915_v51, -inf }
 0x376   : > { %920 = vmax.xlane.f32.xlu0 %v919_v53 }
 0x378   : > { %v1007_v54 = vpop.f32.mrb[8].mxu1 }
 0x379   : > { %v2175_v55 = vpop.f32.mrb[9].mxu1  ;;  %v1011_v56 = vsel %vm507_vm7, %v1007_v54, -inf }
 0x37a   : > { %1012 = vmax.xlane.f32.xlu0 %v1011_v56  ;;  %v594_v55 = vstv %s593_s19  ;;  %v685_v56 = vstv %s2044_s23  ;;  %s2081_s19 = sshll.u32 %s2598_s28, 9  ;;  %s1908_s23 = sshll.u32 %s2886_s15, 4  ;;  %s2936_s23 = int_to_ptr.vmem [resolvable:$true] %s1908_s23 }
 0x37b   : > { %s2934_s11 = scalar_lea.hbm %s3022_s7, %s2081_s19 }
 0x37c   : > { %v1254_v57 = vpop.f32.mrb[10].mxu1 }
 0x37d   : > { %v2190_v58 = vpop.f32.mrb[11].mxu1  ;;  %v1258_v59 = vsel %vm507_vm7, %v1254_v57, -inf }
 0x37e   : > { %1259 = vmax.xlane.f32.xlu1 %v1258_v59 }
 0x380   : > { %v1346_v60 = vpop.f32.mrb[12].mxu1 }
 0x381   : > { %v2195_v61 = vpop.f32.mrb[13].mxu1  ;;  %v1350_v62 = vsel %vm507_vm7, %v1346_v60, -inf }
 0x382   : > { %1351 = vmax.xlane.f32.xlu0 %v1350_v62 }
 0x384   : > { %v2828_v63 = vpop.f32.mrb[14].mxu1 }
 0x385   : > { %v2210_v0 = vpop.f32.mrb[15].mxu1  ;;  %v1597_v1 = vsel %vm507_vm7, %v2828_v63, -inf }
 0x386   : > { %1598 = vmax.xlane.f32.xlu1 %v1597_v1  ;;  %v931_v1 = vstv %s2049_s9 }
 0x388   : > { %v2832_v2 = vpop.f32.mrb[16].mxu1 }
 0x389   : > { %v2215_v3 = vpop.f32.mrb[17].mxu1  ;;  %v1689_v4 = vsel %vm507_vm7, %v2832_v2, -inf }
 0x38a   : > { %1690 = vmax.xlane.f32.xlu0 %v1689_v4 }
 0x397   : > { %688 = vrot.lane.b32.xlu1 %v2769_v30, %s2527_s17 }
 0x3fb   : > { %v584_v5 = vpop.xlane.xlu0 %583 }
 0x3fc   : > { %v585_v7 = vsub.f32 %v578_v45, %v584_v5 }
 0x3fe   : > { %v586_v8 = vmul.f32 1.442695, %v585_v7 }
 0x3ff   : > { %v675_v9 = vpop.xlane.xlu1 %674 }
 0x400   : > { %2331 = vpow2.f32 %v586_v8  ;;  %v676_v10 = vsub.f32 %v669_v48, %v675_v9 }
 0x402   : > { %v677_v11 = vmul.f32 1.442695, %v676_v10 }
 0x403   : > { %v921_v12 = vpop.xlane.xlu0 %920 }
 0x404   : > { %2333 = vpow2.f32 %v677_v11  ;;  %v922_v13 = vsub.f32 %v915_v51, %v921_v12 }
 0x406   : > { %v923_v14 = vmul.f32 1.442695, %v922_v13  ;;  %v1270_v13 = vstv %s2058_s10  ;;  %s1882_s10 = scalar_lea.sflag [#allocation9], %s2709_s18 }
 0x407   : > { %v1013_v15 = vpop.xlane.xlu0 %1012 }
 0x408   : > { %2335 = vpow2.f32 %v923_v14  ;;  %v1014_v16 = vsub.f32 %v1007_v54, %v1013_v15  ;;  %v1362_v14 = vstv %s2061_s16  ;;  %s2408_s16 = scalar_lea.vmem %s2936_s23, 512 }
 0x409   : > { %p2409_p9 = scmp.ne.s32.totalorder %s2936_s23, %s2408_s16 }
 0x40a   : > { %v2838_v17 = vpop.eup %2331  ;;  %v1015_v18 = vmul.f32 1.442695, %v1014_v16 }
 0x40b   : > { %v1260_v19 = vpop.xlane.xlu1 %1259  ;;  %v588_v20 = vsel %vm507_vm7, %v2838_v17, 0.0  ;;  %p2410_p13 = pnand %p2409_p9, %p3037_p11 }
 0x40c   : > { %2337 = vpow2.f32 %v1015_v18  ;;  %v1261_v21 = vsub.f32 %v1254_v57, %v1260_v19  ;;  %589 = vadd.xlane.f32.xlu1 %v588_v20 }
 0x40d   : > { %p2411_p7 = pneg %p2410_p13 }
 0x40e   : > { %v2842_v22 = vpop.eup %2333  ;;  %v1262_v23 = vmul.f32 1.442695, %v1261_v21 }
 0x40f   : > { %v1352_v24 = vpop.xlane.xlu0 %1351  ;;  %v679_v25 = vsel %vm507_vm7, %v2842_v22, 0.0 }
 0x410   : > { %2339 = vpow2.f32 %v1262_v23  ;;  %v1353_v26 = vsub.f32 %v1346_v60, %v1352_v24  ;;  %680 = vadd.xlane.f32.xlu0 %v679_v25 }
 0x412   : > { %v2846_v27 = vpop.eup %2335  ;;  %v1354_v28 = vmul.f32 1.442695, %v1353_v26 }
 0x413   : > { %v1599_v31 = vpop.xlane.xlu1 %1598  ;;  %v925_v32 = vsel %vm507_vm7, %v2846_v27, 0.0 }
 0x414   : > { %2341 = vpow2.f32 %v1354_v28  ;;  %926 = vadd.xlane.f32.xlu1 %v925_v32  ;;  %v1600_v40 = vsub.f32 %v2828_v63, %v1599_v31 }
 0x416   : > { %v2850_v33 = vpop.eup %2337  ;;  %v1601_v42 = vmul.f32 1.442695, %v1600_v40 }
 0x417   : > { %v689_v34 = vpop.permute.xlu1 %688  ;;  %v1017_v35 = vsel %vm507_vm7, %v2850_v33, 0.0  ;;  %v1691_v41 = vpop.xlane.xlu0 %1690 }
 0x418   : > { %1018 = vadd.xlane.f32.xlu0 %v1017_v35  ;;  %2157 = vmatpush3.msra.mxu0 %v689_v34  ;;  %v1692_v43 = vsub.f32 %v2832_v2, %v1691_v41  ;;  %2343 = vpow2.f32 %v1601_v42  ;;  %v1023_v2 = vstv %s2052_s12 }
 0x419   : > { %2161 = vmatprep.subr.mxu0 %v2516_v6 }
 0x41a   : > { %v2855_v36 = vpop.eup %2339  ;;  %v1693_v44 = vmul.f32 1.442695, %v1692_v43 }
 0x41b   : > { %v1264_v37 = vsel %vm507_vm7, %v2855_v36, 0.0 }
 0x41c   : > { %1265 = vadd.xlane.f32.xlu1 %v1264_v37  ;;  %2345 = vpow2.f32 %v1693_v44 }
 0x41e   : > { %v2859_v38 = vpop.eup %2341 }
 0x41f   : > { %v1356_v39 = vsel %vm507_vm7, %v2859_v38, 0.0 }
 0x420   : > { %1357 = vadd.xlane.f32.xlu0 %v1356_v39 }
 0x422   : > { %v2872_v45 = vpop.eup %2343 }
 0x423   : > { %v1603_v46 = vsel %vm507_vm7, %v2872_v45, 0.0 }
 0x426   : > { %v2876_v47 = vpop.eup %2345 }
 0x42d   : > { %1026 = vrot.lane.b32.xlu1 %v2769_v30, %s2528_s22 }
 0x431   : > { %1102 = vrot.lane.b32.xlu1 %v2765_v29, %s2528_s22  ;;  %s2070_s22 = sld [smem:[#allocation6 + $0x83]] }
 0x435   : > { %1365 = vrot.lane.b32.xlu1 %v2769_v30, %s2529_s30 }
 0x436   : > { %764 = vrot.lane.b32.xlu0 %v2765_v29, %s2527_s17  ;;  %s2067_s17 = sld [smem:[#allocation6 + $0x3]] }
 0x437   : > { %v1701_v31 = vstv %s2070_s22 }
 0x439   : > { %1441 = vrot.lane.b32.xlu1 %v2765_v29, %s2529_s30  ;;  %s2531_s30 = smov 8  }
 0x43c   : > { %v1609_v28 = vstv %s2067_s17  ;;  %s2533_s17 = smov [#allocation8]  }
 0x43d   : > { %1780 = vrot.lane.b32.xlu1 %v2765_v29, %s2530_s14  ;;  %v1695_v29 = vsel %vm507_vm7, %v2876_v47, 0.0  ;;  %s2412_s22 = sshll.u32 %s2533_s17, 4  ;;  %s2413_s22 = int_to_ptr.vmem [resolvable:$false] %s2412_s22 }
 0x43e   : > { %p2415_p0 = scmp.lt.s32.totalorder %s2936_s23, %s2413_s22 }
 0x455   : > { %1604 = vadd.xlane.f32.xlu0 %v1603_v46 }
 0x459   : > { %1696 = vadd.xlane.f32.xlu0 %v1695_v29 }
 0x46f   : > { %1704 = vrot.lane.b32.xlu0 %v2769_v30, %s2530_s14  ;;  %s2532_s14 = smov 16  }
 0x499   : > { %v590_v48 = vpop.xlane.xlu1 %589 }
 0x49a   : > { %2347 = vrcp.f32 %v590_v48 }
 0x49d   : > { %v681_v49 = vpop.xlane.xlu0 %680 }
 0x49e   : > { %2349 = vrcp.f32 %v681_v49 }
 0x4a1   : > { %v927_v50 = vpop.xlane.xlu1 %926 }
 0x4a2   : > { %2351 = vrcp.f32 %v927_v50 }
 0x4a4   : > { %v2348_v51 = vpop.eup %2347 }
 0x4a5   : > { %v1019_v52 = vpop.xlane.xlu0 %1018  ;;  %v592_v53 = vmul.f32 %v2348_v51, %v2838_v17 }
 0x4a6   : > { %2353 = vrcp.f32 %v1019_v52 }
 0x4a7   : > { %v595_v58 = vmul.f32 %v594_v55, %v592_v53 }
 0x4a8   : > { %v2350_v54 = vpop.eup %2349 }
 0x4a9   : > { %v683_v30 = vmul.f32 %v2350_v54, %v2842_v22  ;;  %v1266_v57 = vpop.xlane.xlu1 %1265 }
 0x4aa   : > { %2355 = vrcp.f32 %v1266_v57 }
 0x4ab   : > { %v686_v59 = vmul.f32 %v685_v56, %v683_v30 }
 0x4ac   : > { %v2352_v60 = vpop.eup %2351 }
 0x4ad   : > { %v1358_v61 = vpop.xlane.xlu0 %1357  ;;  %v687_v62 = vadd.f32 %v686_v59, %v595_v58  ;;  %v929_v63 = vmul.f32 %v2352_v60, %v2846_v27  ;;  %v1027_v9 = vpop.permute.xlu1 %1026 }
 0x4ae   : > { %2357 = vrcp.f32 %v1358_v61 }
 0x4af   : > { %2159 = vmatmul.mubr.msk.f32.vlgmr.msra.gmra.mrb[2].mxu0 %vm507_vm7, %v687_v62  ;;  %840 = vst.msk [vmem:[%s2886_s15] sm:$0xff] %vm507_vm7, %v687_v62  ;;  %v932_v5 = vmul.f32 %v931_v1, %v929_v63 }
 0x4b0   : > { %v2354_v0 = vpop.eup %2353  ;;  %2163 = vmatprep.mubr.msk.f32.mxu0 %vm2515_vm0, %v2516_v6 }
 0x4b1   : > { %v1021_v3 = vmul.f32 %v2354_v0, %v2850_v33  ;;  %v765_v4 = vpop.permute.xlu0 %764  ;;  %v1103_v18 = vpop.permute.xlu1 %1102 }
 0x4b2   : > { %2162 = vmatpush3.msra.mxu0 %v765_v4 }
 0x4b3   : > { %v1024_v7 = vmul.f32 %v1023_v2, %v1021_v3  ;;  %2176 = vmatprep.subr.mxu0 %v2516_v6 }
 0x4b4   : > { %v2356_v8 = vpop.eup %2355 }
 0x4b5   : > { %v1025_v10 = vadd.f32 %v1024_v7, %v932_v5  ;;  %v1268_v11 = vmul.f32 %v2356_v8, %v2855_v36  ;;  %v1366_v20 = vpop.permute.xlu1 %1365 }
 0x4b7   : > { %2164 = vmatmul.mubr.msk.f32.vlgmr.msra.gmra.mrb[2].mxu0 %vm507_vm7, %v595_v58  ;;  %2055 = vst.msk [vmem:[%s2886_s15 + $0x8] sm:$0xff] %vm507_vm7, %v1025_v10  ;;  %v1271_v16 = vmul.f32 %v1270_v13, %v1268_v11 }
 0x4b8   : > { %v2358_v12 = vpop.eup %2357  ;;  %2177 = vmatpush3.msra.mxu0 %v1027_v9  ;;  %2178 = vmatprep.mubr.msk.f32.mxu0 %vm2515_vm0, %v2516_v6 }
 0x4b9   : > { %v1360_v15 = vmul.f32 %v2358_v12, %v2859_v38  ;;  %2181 = vmatprep.subr.mxu0 %v2516_v6  ;;  %v1442_v21 = vpop.permute.xlu1 %1441 }
 0x4bb   : > { %v1363_v17 = vmul.f32 %v1362_v14, %v1360_v15  ;;  %2179 = vmatmul.mubr.msk.f32.vlgmr.msra.gmra.mrb[4].mxu0 %vm507_vm7, %v1025_v10 }
 0x4bc   : > { %2182 = vmatpush3.msra.mxu0 %v1103_v18  ;;  %2183 = vmatprep.mubr.msk.f32.mxu0 %vm2515_vm0, %v2516_v6 }
 0x4bd   : > { %2196 = vmatprep.subr.mxu0 %v2516_v6  ;;  %v1364_v19 = vadd.f32 %v1363_v17, %v1271_v16  ;;  %v1781_v36 = vpop.permute.xlu1 %1780 }
 0x4bf   : > { %2064 = vst.msk [vmem:[%s2886_s15 + $0x10] sm:$0xff] %vm507_vm7, %v1364_v19 }
 0x4c3   : > { %2184 = vmatmul.mubr.msk.f32.vlgmr.msra.gmra.mrb[4].mxu0 %vm507_vm7, %v932_v5 }
 0x4c4   : > { %2197 = vmatpush3.msra.mxu0 %v1366_v20  ;;  %2198 = vmatprep.mubr.msk.f32.mxu0 %vm2515_vm0, %v2516_v6 }
 0x4c5   : > { %2201 = vmatprep.subr.mxu0 %v2516_v6 }
 0x4c7   : > { %2199 = vmatmul.mubr.msk.f32.vlgmr.msra.gmra.mrb[6].mxu0 %vm507_vm7, %v1364_v19 }
 0x4c8   : > { %2202 = vmatpush3.msra.mxu0 %v1442_v21  ;;  %2203 = vmatprep.mubr.msk.f32.mxu0 %vm2515_vm0, %v2516_v6 }
 0x4c9   : > { %2216 = vmatprep.subr.mxu0 %v2516_v6 }
 0x4cf   : > { %2204 = vmatmul.mubr.msk.f32.vlgmr.msra.gmra.mrb[6].mxu0 %vm507_vm7, %v1271_v16 }
 0x4d0   : > { %2218 = vmatprep.mubr.msk.f32.mxu0 %vm2515_vm0, %v2516_v6 }
 0x4e2   : > { %v1605_v22 = vpop.xlane.xlu0 %1604 }
 0x4e3   : > { %2359 = vrcp.f32 %v1605_v22 }
 0x4e6   : > { %v1697_v23 = vpop.xlane.xlu0 %1696 }
 0x4e7   : > { %2361 = vrcp.f32 %v1697_v23 }
 0x4ea   : > { %v1705_v24 = vpop.permute.xlu0 %1704 }
 0x4eb   : > { %2217 = vmatpush3.msra.mxu0 %v1705_v24 }
 0x4ec   : > { %2221 = vmatprep.subr.mxu0 %v2516_v6 }
 0x4ed   : > { %v2360_v25 = vpop.eup %2359 }
 0x4ee   : > { %v1607_v26 = vmul.f32 %v2360_v25, %v2872_v45 }
 0x4f0   : > { %v1610_v33 = vmul.f32 %v1609_v28, %v1607_v26 }
 0x4f1   : > { %v2362_v27 = vpop.eup %2361 }
 0x4f2   : > { %v1699_v32 = vmul.f32 %v2362_v27, %v2876_v47 }
 0x4f4   : > { %v1702_v34 = vmul.f32 %v1701_v31, %v1699_v32 }
 0x4f6   : > { %v1703_v35 = vadd.f32 %v1702_v34, %v1610_v33 }
 0x4f8   : > { %2219 = vmatmul.mubr.msk.f32.vlgmr.msra.gmra.mrb[8].mxu0 %vm507_vm7, %v1703_v35  ;;  %2073 = vst.msk [vmem:[%s2886_s15 + $0x18] sm:$0xff] %vm507_vm7, %v1703_v35  ;;  %s2414_s15 = scalar_lea.vmem %s2413_s22, 1024 }
 0x4f9   : > { %2222 = vmatpush3.msra.mxu0 %v1781_v36  ;;  %2223 = vmatprep.mubr.msk.f32.mxu0 %vm2515_vm0, %v2516_v6  ;;  %p2416_p3 = scmp.lt.s32.totalorder %s2414_s15, %s2408_s16 }
 0x4fb   : > { %p2417_p12 = por %p2416_p3, %p2415_p0 }
 0x4fd   : > { %p2418_p5 = pnand %p2417_p12, %p2411_p7 }
 0x500   : > { %2224 = vmatmul.mubr.msk.f32.vlgmr.msra.gmra.mrb[8].mxu0 %vm507_vm7, %v1610_v33 }
 0x58a   : > { %v836_v37 = vpop.f32.mrb[2].mxu0 }
 0x58b   : > { %v2165_v38 = vpop.f32.mrb[3].mxu0 }
 0x596   : > { %v1174_v39 = vpop.f32.mrb[4].mxu0 }
 0x597   : > { %1859 = vrot.lane.b32.xlu0 %v1174_v39, %s2531_s30  ;;  %v2185_v40 = vpop.f32.mrb[5].mxu0 }
 0x5a2   : > { %v1513_v41 = vpop.f32.mrb[6].mxu0 }
 0x5a3   : > { %1863 = vrot.lane.b32.xlu1 %v1513_v41, %s2532_s14  ;;  %v2205_v42 = vpop.f32.mrb[7].mxu0 }
 0x5a4   : > { %2421 = shalt.err (!%p2418_p5)
}
 0x5a5   : > { %s2422_s14 = scalar_lea.hbm %s2934_s11, 512  ;;  %s2426_s12 = scalar_lea.hbm %s3022_s7, 1024 }
 0x5a6   : > { %p2423_p10 = scmp.ne.s32.totalorder %s2934_s11, %s2422_s14  ;;  %p2427_p4 = scmp.lt.u32.totalorder %s2934_s11, %s3022_s7 }
 0x5a7   : > { %p2428_p6 = scmp.lt.u32.totalorder %s2426_s12, %s2422_s14  ;;  %p2430_p9 = scmp.lt.u32.totalorder %s2422_s14, %s2934_s11 }
 0x5a8   : > { %p2424_p2 = pnand %p2423_p10, %p3037_p11 }
 0x5a9   : > { %p2429_p8 = por %p2428_p6, %p2427_p4 }
 0x5aa   : > { %p2425_p1 = pneg %p2424_p2 }
 0x5ab   : > { %p2431_p13 = por %p2430_p9, %p2429_p8 }
 0x5ad   : > { %p2432_p7 = pnand %p2431_p13, %p2425_p1 }
 0x5af   : > { %2435 = shalt.err (!%p2432_p7)
}
 0x5b0   : > { %s2534_s16 = smov 128   ;;  %s2535_s15 = smov 24   ;;  %vm1871_vm8 = vcmask 130048   ;;  %vm1873_vm9 = vcmask 195584  }
 0x5b1   : > { %2253 = dma.vmem_to_hbm [thread:$0]  (%p3037_p11), %s2936_s23, 512, %s2934_s11, %s1882_s10, %s2534_s16, %s2534_s16, %s2531_s30  }
 0x5b2   : > { %s2076_s14 = sshll.u32 %s2598_s28, 7  ;;  %s311_s19 = scalar_lea.vmem [#allocation7], %s2032_s29 }
 0x5b3   : > { %s1895_s9 = sshll.u32 %s311_s19, 4  ;;  %s2970_s23 = scalar_lea.hbm %s3021_s6, %s2076_s14  ;;  %s2972_s9 = int_to_ptr.vmem [resolvable:$true] %s1895_s9 }
 0x5b4   : > { %s1877_s28 = scalar_lea.sflag [#allocation4], %s2709_s18  ;;  %s2436_s29 = scalar_lea.vmem %s2972_s9, 128 }
 0x5b5   : > { %p2437_p0 = scmp.ne.s32.totalorder %s2972_s9, %s2436_s29  ;;  %s2536_s11 = smov [#allocation7]  }
 0x5b6   : > { %s2440_s10 = sshll.u32 %s2536_s11, 4  ;;  %s2441_s10 = int_to_ptr.vmem [resolvable:$false] %s2440_s10 }
 0x5b7   : > { %p2438_p3 = pnand %p2437_p0, %p3037_p11  ;;  %s2442_s17 = scalar_lea.vmem %s2441_s10, 256 }
 0x5b8   : > { %p2443_p5 = scmp.lt.s32.totalorder %s2972_s9, %s2441_s10  ;;  %p2444_p10 = scmp.lt.s32.totalorder %s2442_s17, %s2436_s29 }
 0x5b9   : > { %p2439_p12 = pneg %p2438_p3 }
 0x5ba   : > { %p2445_p2 = por %p2444_p10, %p2443_p5 }
 0x5bc   : > { %p2446_p1 = pnand %p2445_p2, %p2439_p12 }
 0x5d3   : > { %v1852_v6 = vpop.f32.mrb[8].mxu0 }
 0x5d4   : > { %1867 = vrot.lane.b32.xlu0 %v1852_v6, %s2535_s15  ;;  %v2225_v43 = vpop.f32.mrb[9].mxu0 }
 0x609   : > { %v1860_v44 = vpop.permute.xlu0 %1859 }
 0x60a   : > { %v1870_v46 = vsel %vm507_vm7, %v836_v37, %v1860_v44 }
 0x615   : > { %v1864_v45 = vpop.permute.xlu1 %1863 }
 0x616   : > { %v1872_v47 = vsel %vm1871_vm8, %v1870_v46, %v1864_v45 }
 0x646   : > { %v1868_v29 = vpop.permute.xlu0 %1867 }
 0x647   : > { %v1874_v48 = vsel %vm1873_vm9, %v1872_v47, %v1868_v29 }
 0x648   : > { %1875 = vst.msk [vmem:[%s311_s19] sm:$0xff] %vm331_vm1, %v1874_v48 }
 0x649   : > { %2449 = shalt.err (!%p2446_p1)
}
 0x64a   : > { %s2450_s18 = scalar_lea.hbm %s2970_s23, 128  ;;  %s2454_s15 = scalar_lea.hbm %s3021_s6, 256 }
 0x64b   : > { %p2451_p4 = scmp.ne.s32.totalorder %s2970_s23, %s2450_s18  ;;  %p2455_p9 = scmp.lt.u32.totalorder %s2970_s23, %s3021_s6 }
 0x64c   : > { %p2456_p13 = scmp.lt.u32.totalorder %s2454_s15, %s2450_s18  ;;  %p2458_p0 = scmp.lt.u32.totalorder %s2450_s18, %s2970_s23 }
 0x64d   : > { %p2452_p6 = pnand %p2451_p4, %p3037_p11 }
 0x64e   : > { %p2457_p7 = por %p2456_p13, %p2455_p9 }
 0x64f   : > { %p2453_p8 = pneg %p2452_p6 }
 0x650   : > { %p2459_p3 = por %p2458_p0, %p2457_p7 }
 0x652   : > { %p2460_p12 = pnand %p2459_p3, %p2453_p8 }
 0x654   : > { %2463 = shalt.err (!%p2460_p12)
}
 0x655   : > { %2252 = dma.vmem_to_hbm [thread:$0]  (%p3037_p11), %s2972_s9, 128, %s2970_s23, %s1877_s28  }
 0x656 PF: > { %s1923_s12 = sand.u32 1, %s2498_s24   ;;  %p3038_p5 = scmp.ne.s32.totalorder %s3027_s8, 0 }
 0x657   : > { %p3039_p10 = scmp.ge.s32.totalorder %s2510_s27, 2  ;;  %s1924_s30 = scalar_lea.sflag [#allocation4], %s1923_s12 }
 0x659   : > { %p2265_p2 = pnand %p3039_p10, %p3038_p5 }
 0x65b   : > { %2489 = dma.done.wait (!%p2265_p2), %s1924_s30, 128  }
 0x65c   : > { %2491 = vsyncadd (!%p2265_p2), %s1924_s30, 4294967168  ;;  %s1933_s29 = scalar_lea.sflag [#allocation9], %s1923_s12 }
 0x65d   : > { %2493 = dma.done.wait (!%p2265_p2), %s1933_s29, 512  }
 0x65e   : > { %2495 = vsyncadd (!%p2265_p2), %s1933_s29, 4294966784  ;;  %p25_p11 = scmp.ge.s32.totalorder %s2628_s13, 4   ;;  %s3040_s24 = smov %s2502_s25 }
 0x65f   : > { %s3041_s25 = smov %s2506_s26  ;;  %s3042_s26 = smov %s2652_s20 }
 0x660   : > { %s3043_s27 = smov %s2628_s13  ;;  %27 = sbr.rel (!%p25_p11) target bundleno = 8 (0x8), region = 114 }
 0x667   :  { %1938 = vsyncpa [#allocation3], 1 }
 0x668   :  { %1940 = vsyncpa [#allocation3 + $0x1], 1 }
 0x669   :  { %1941 = vsyncpa [#allocation4], 1 }
 0x66a   :  { %1943 = vsyncpa [#allocation4 + $0x1], 1 }
 0x66b   :  { %1944 = vsyncpa [#allocation9], 1 }
 0x66c   :  { %1946 = vsyncpa [#allocation9 + $0x1], 1 }
 0x66d   :  { %1947 = vsyncpa [#allocation5], 1 }
 0x66e   :  { %1949 = vsyncpa [#allocation5 + $0x1], 1 }

</bundles_post_ra>
